<compile_context>
chip_gen: v7x
topology: tpu7x:2x2x1
jax: 0.10.0
libtpu: 0.0.40
codegen_flags: <defaults>
</compile_context>

<pallas_src>
import math

import jax
import jax.numpy as jnp
from jax.experimental import pallas as pl
from jax.experimental.pallas import tpu as pltpu


# Matmul-operand dtype.  jnp.bfloat16 gives ~2x MXU throughput and half the
# weight DMA on v6e/v7x; float32 kept as default so the strict reference check
# in __main__ passes bit-tight.
COMPUTE_DTYPE = jnp.float32


# ---------------------------------------------------------------------------
# Small helpers
# ---------------------------------------------------------------------------
def _round_up(x, m):
    return ((x + m - 1) // m) * m


def _pad_to(a, shape):
    pads = [(0, s - d) for d, s in zip(a.shape, shape)]
    if any(p[1] for p in pads):
        return jnp.pad(a, pads)
    return a


def _pick_div_tile(n, prefs):
    for p in prefs:
        if n % p == 0:
            return p
    return n


_VMEM_CAP = None


def _vmem_capacity_bytes():
    """Physical VMEM per TensorCore (64 MiB on v7x, 128 MiB on v5e/v6e)."""
    global _VMEM_CAP
    if _VMEM_CAP is None:
        try:
            _VMEM_CAP = int(pltpu.get_tpu_info().vmem_capacity_bytes)
        except Exception:
            _VMEM_CAP = 64 << 20  # conservative (v7x per-TC size)
    return _VMEM_CAP


def _vmem_limit(footprint_bytes):
    """Explicit scoped-VMEM limit: actual footprint + headroom, capped to HW."""
    cap = _vmem_capacity_bytes()
    want = max(32 << 20, int(footprint_bytes) * 5 // 4 + (4 << 20))
    return int(min(want, cap * 3 // 4))


_SINGLE_BUFFER_OK = None


def _single_buffer_weights_supported():
    """Probe pipeline_mode=pl.Buffered(buffer_count=1) on a constant-index
    operand (halves resident weight VMEM: W_hh / W_proj never change across the
    grid).  Verified numerically; falls back to default double-buffering on any
    failure so the main kernels always lower and run."""
    global _SINGLE_BUFFER_OK
    if _SINGLE_BUFFER_OK is not None:
        return _SINGLE_BUFFER_OK
    try:
        with jax.ensure_compile_time_eval():
            def k(x_ref, w_ref, o_ref):
                o_ref[...] = x_ref[...] + w_ref[...]

            x = jnp.arange(16 * 128, dtype=jnp.float32).reshape(16, 128)
            w = jnp.full((8, 128), 3.0, jnp.float32)
            out = pl.pallas_call(
                k,
                out_shape=jax.ShapeDtypeStruct((16, 128), jnp.float32),
                grid_spec=pltpu.PrefetchScalarGridSpec(
                    num_scalar_prefetch=0,
                    grid=(2,),
                    in_specs=[
                        pl.BlockSpec((8, 128), lambda i: (i, 0)),
                        pl.BlockSpec((8, 128), lambda i: (0, 0),
                                     pipeline_mode=pl.Buffered(buffer_count=1)),
                    ],
                    out_specs=pl.BlockSpec((8, 128), lambda i: (i, 0)),
                ),
            )(x, w)
            out = jax.block_until_ready(out)
            _SINGLE_BUFFER_OK = bool(jnp.allclose(out, x + 3.0))
    except Exception:
        _SINGLE_BUFFER_OK = False
    return _SINGLE_BUFFER_OK


def _const2d_spec(shape, single_buffer):
    """BlockSpec for an operand whose block never changes across the grid."""
    if single_buffer:
        return pl.BlockSpec(shape, lambda b, t: (0, 0),
                            pipeline_mode=pl.Buffered(buffer_count=1))
    return pl.BlockSpec(shape, lambda b, t: (0, 0))


# ---------------------------------------------------------------------------
# Kernel 1: row/column-tiled GEMM with bias (hoisted layer-0 input projection)
# ---------------------------------------------------------------------------
def matmul_bias_kernel(x_ref, w_ref, b_ref, o_ref):
    w = w_ref[...]
    acc = jnp.dot(x_ref[...].astype(w.dtype), w,
                  preferred_element_type=jnp.float32)
    o_ref[...] = (acc + b_ref[...]).astype(o_ref.dtype)


def matmul_bias(x2d, w, b):
    """(N, K) @ (K, M) + (1, M) -> (N, M) f32.  Both grid axes parallel."""
    N, K = x2d.shape
    M = w.shape[1]
    tm = _pick_div_tile(N, (512, 256, 128, 64, 32, 16, 8))
    tn = M if M <= 1024 else _pick_div_tile(M, (1024, 512, 256, 128))
    footprint = 2 * (tm * K + K * tn + tn + tm * tn) * 4
    return pl.pallas_call(
        matmul_bias_kernel,
        out_shape=jax.ShapeDtypeStruct((N, M), jnp.float32),
        grid_spec=pltpu.PrefetchScalarGridSpec(
            num_scalar_prefetch=0,
            grid=(N // tm, M // tn),
            in_specs=[
                pl.BlockSpec((tm, K), lambda i, j: (i, 0)),
                pl.BlockSpec((K, tn), lambda i, j: (0, j)),
                pl.BlockSpec((1, tn), lambda i, j: (0, j)),
            ],
            out_specs=pl.BlockSpec((tm, tn), lambda i, j: (i, j)),
        ),
        compiler_params=pltpu.CompilerParams(
            dimension_semantics=("parallel", "parallel"),
            vmem_limit_bytes=_vmem_limit(footprint),
        ),
    )(x2d, w, b)


# ---------------------------------------------------------------------------
# Kernel 2: time-blocked recurrence + fused projection epilogue
#   h_t = tanh(h_{t-1} @ W_hh + U[t]);  out[t] = h_t @ W_proj + b_proj
# Intermediate layers: (W_proj, b_proj) = next layer's (W_ih, b) -> out is the
# next layer's U (no HBM round trip for hidden states).
# Last layer:          (W_proj, b_proj) = nn.Linear -> out written batch-major.
# ---------------------------------------------------------------------------
def rnn_recurrence_project(u, w_hh, w_proj, b_proj, *, tt, tb, batch_major_out):
    t_pad, b_pad, h_pad = u.shape
    p_pad = w_proj.shape[1]
    nt = t_pad // tt
    nb = b_pad // tb
    single = _single_buffer_weights_supported()
    wbuf = 1 if single else 2
    wbytes = jnp.dtype(w_hh.dtype).itemsize

    def kernel(u_ref, whh_ref, wp_ref, bp_ref, o_ref, h_ref, hs_ref):
        # Reset the carried hidden state at the start of each batch block.
        @pl.when(pl.program_id(1) == 0)
        def _init():
            h_ref[...] = jnp.zeros_like(h_ref)

        whh = whh_ref[...]  # resident across the whole sequence

        def step(t, h_prev):
            pre = jnp.dot(h_prev.astype(whh.dtype), whh,
                          preferred_element_type=jnp.float32) + u_ref[t]
            h_new = jnp.tanh(pre)            # f32 elementwise (v5e-safe)
            hs_ref[t] = h_new                # hidden slab stays in VMEM
            return h_new

        h_ref[...] = jax.lax.fori_loop(0, tt, step, h_ref[...], unroll=True)

        # Epilogue: one MXU-friendly (tt*tb, H) @ (H, P) GEMM over the slab.
        wp = wp_ref[...]
        proj = jnp.dot(hs_ref[...].reshape(tt * tb, h_pad).astype(wp.dtype), wp,
                       preferred_element_type=jnp.float32) + bp_ref[...]
        proj = proj.reshape(tt, tb, p_pad).astype(o_ref.dtype)
        if batch_major_out:
            # o_ref block is (tb, tt, P): write each time step into sublane t,
            # so the final output is batch-first straight from VMEM (no XLA
            # transpose afterwards).  Static, unrolled stores.
            for t in range(tt):
                o_ref[:, t, :] = proj[t]
        else:
            o_ref[...] = proj                # time-major U for the next layer

    if batch_major_out:
        out_shape = jax.ShapeDtypeStruct((b_pad, t_pad, p_pad), jnp.float32)
        out_spec = pl.BlockSpec((tb, tt, p_pad), lambda b, t: (b, t, 0))
    else:
        out_shape = jax.ShapeDtypeStruct((t_pad, b_pad, p_pad), jnp.float32)
        out_spec = pl.BlockSpec((tt, tb, p_pad), lambda b, t: (t, b, 0))

    footprint = (
        2 * tt * tb * h_pad * 4             # double-buffered U input blocks
        + 2 * tt * tb * p_pad * 4           # double-buffered output blocks
        + tt * tb * h_pad * 4               # hidden-state slab scratch
        + tb * h_pad * 4                    # carried hidden state
        + wbuf * h_pad * h_pad * wbytes     # W_hh
        + wbuf * h_pad * p_pad * wbytes     # W_proj
        + wbuf * p_pad * 4                  # bias (upper bound)
    )

    return pl.pallas_call(
        kernel,
        out_shape=out_shape,
        grid_spec=pltpu.PrefetchScalarGridSpec(
            num_scalar_prefetch=0,
            grid=(nb, nt),                  # batch parallel, time sequential
            in_specs=[
                pl.BlockSpec((tt, tb, h_pad), lambda b, t: (t, b, 0)),
                _const2d_spec((h_pad, h_pad), single),
                _const2d_spec((h_pad, p_pad), single),
                _const2d_spec((1, p_pad), single),
            ],
            out_specs=out_spec,
            scratch_shapes=[
                pltpu.VMEM((tb, h_pad), jnp.float32),        # carried h
                pltpu.VMEM((tt, tb, h_pad), jnp.float32),    # block hidden slab
            ],
        ),
        compiler_params=pltpu.CompilerParams(
            dimension_semantics=("parallel", "arbitrary"),
            vmem_limit_bytes=_vmem_limit(footprint),
        ),
    )(u, w_hh, w_proj, b_proj)


# ---------------------------------------------------------------------------
# Full forward
# ---------------------------------------------------------------------------
def rnn_forward(x, params, *, compute_dtype=COMPUTE_DTYPE):
    """x: (T, B, input_size) time-major -> (B, T, n_labels) batch-first."""
    T, B, I = x.shape
    H = params["rnn"][0]["w_hh"].shape[0]
    L = params["lin_w"].shape[1]
    n_layers = len(params["rnn"])

    b_pad = _round_up(B, 8)
    # Lane dims padded to 128 (full MXU tile on v5e; see review note on 256 for
    # v6e/v7x when H % 256 == 128 -- not applied to avoid waste at small H).
    h_pad = _round_up(H, 128)
    l_pad = _round_up(L, 128)
    i_pad = _round_up(I, 128)

    # Batch tile: split across v7x's two TensorCores when the batch allows it.
    tb = b_pad // 2 if (b_pad >= 16 and b_pad % 16 == 0) else b_pad

    # Time block derived from a per-generation VMEM budget, capped at 32 so the
    # unrolled recurrence loop stays small.
    w_bytes = jnp.dtype(compute_dtype).itemsize
    budget = _vmem_capacity_bytes() // 2
    avail = budget - 2 * 2 * h_pad * h_pad * w_bytes - (4 << 20)
    per_tt = 5 * tb * h_pad * 4     # 2x U in + 2x out + hs slab, per time step
    tt_cap = 8
    if avail > 0:
        tt_cap = max(8, (avail // per_tt) // 8 * 8)
    tt = min(32, tt_cap, _round_up(T, 8))
    while tt > 8 and _round_up(T, tt) - T > max(T // 4, 8):
        tt -= 8
    t_pad = _round_up(T, tt)

    # All padding once, up front; every inter-layer slab stays (t_pad, b_pad, .)
    # so there are no per-layer pad/slice HBM copies.
    a = _pad_to(x.astype(jnp.float32), (t_pad, b_pad, i_pad))

    # Hoisted layer-0 input projection: one big GEMM over all t_pad*b_pad rows.
    lay0 = params["rnn"][0]
    w_ih0 = _pad_to(lay0["w_ih"], (i_pad, h_pad)).astype(compute_dtype)
    b0 = _pad_to(lay0["b"], (1, h_pad))
    u = matmul_bias(a.reshape(t_pad * b_pad, i_pad), w_ih0, b0)
    u = u.reshape(t_pad, b_pad, h_pad)

    out = None
    for li in range(n_layers):
        w_hh = _pad_to(params["rnn"][li]["w_hh"], (h_pad, h_pad)).astype(compute_dtype)
        if li < n_layers - 1:
            nxt = params["rnn"][li + 1]
            w_proj = _pad_to(nxt["w_ih"], (h_pad, h_pad)).astype(compute_dtype)
            b_proj = _pad_to(nxt["b"], (1, h_pad))
            # Output IS the next layer's U (fused input projection epilogue).
            u = rnn_recurrence_project(u, w_hh, w_proj, b_proj,
                                       tt=tt, tb=tb, batch_major_out=False)
        else:
            lw = _pad_to(params["lin_w"], (h_pad, l_pad)).astype(compute_dtype)
            lb = _pad_to(params["lin_b"], (1, l_pad))
            # nn.Linear fused as the epilogue; output emitted batch-first.
            out = rnn_recurrence_project(u, w_hh, lw, lb,
                                         tt=tt, tb=tb, batch_major_out=True)
    return out[:B, :T, :L]


# ---------------------------------------------------------------------------
# Deterministic parameter init (mirrors nn.RNN / nn.Linear U(-1/sqrt(H), .))
# ---------------------------------------------------------------------------
def init_params(key, input_size, hidden_size, num_layers, n_labels):
    params = {"rnn": []}
    k_rnn = 1.0 / math.sqrt(hidden_size)
    for layer in range(num_layers):
        in_dim = input_size if layer == 0 else hidden_size
        key, k1, k2, k3, k4 = jax.random.split(key, 5)
        # stored transposed relative to torch: (in, H) / (H, H)
        w_ih = jax.random.uniform(k1, (in_dim, hidden_size), jnp.float32, -k_rnn, k_rnn)
        w_hh = jax.random.uniform(k2, (hidden_size, hidden_size), jnp.float32, -k_rnn, k_rnn)
        b_ih = jax.random.uniform(k3, (hidden_size,), jnp.float32, -k_rnn, k_rnn)
        b_hh = jax.random.uniform(k4, (hidden_size,), jnp.float32, -k_rnn, k_rnn)
        params["rnn"].append(
            {"w_ih": w_ih, "w_hh": w_hh, "b": (b_ih + b_hh).reshape(1, hidden_size)}
        )
    k_lin = 1.0 / math.sqrt(hidden_size)
    key, k1, k2 = jax.random.split(key, 3)
    params["lin_w"] = jax.random.uniform(
        k1, (hidden_size, n_labels), jnp.float32, -k_lin, k_lin)
    params["lin_b"] = jax.random.uniform(
        k2, (1, n_labels), jnp.float32, -k_lin, k_lin)
    return params


# ---------------------------------------------------------------------------
# Pure-JAX reference (matches torch nn.RNN(tanh) + nn.Linear forward)
# ---------------------------------------------------------------------------
def rnn_forward_ref(x, params):
    h = x
    for layer in params["rnn"]:
        T, B, _ = h.shape
        H = layer["w_hh"].shape[0]
        hs = []
        ht = jnp.zeros((B, H), jnp.float32)
        for t in range(T):
            ht = jnp.tanh(h[t] @ layer["w_ih"] + ht @ layer["w_hh"] + layer["b"])
            hs.append(ht)
        h = jnp.stack(hs, axis=0)
    out = h @ params["lin_w"] + params["lin_b"]
    return jnp.transpose(out, (1, 0, 2))


# ---------------------------------------------------------------------------
if __name__ == "__main__":
    input_size, hidden_size, num_layers, n_labels = 16, 32, 2, 8
    T, B = 8, 2

    key = jax.random.PRNGKey(0)
    key, kx = jax.random.split(key)
    # equal-length sequences: pack_sequence / pad_packed_sequence are identity
    x = jax.random.normal(kx, (T, B, input_size), jnp.float32)
    params = init_params(key, input_size, hidden_size, num_layers, n_labels)

    ref = rnn_forward_ref(x, params)

    # float32 path: strict check against the pure-JAX reference.
    out = jax.block_until_ready(jax.jit(rnn_forward)(x, params))
    assert out.shape == (B, T, n_labels), out.shape
    assert jnp.allclose(out, ref, atol=1e-4, rtol=1e-4), float(
        jnp.max(jnp.abs(out - ref)))

    # bfloat16 matmul-operand fast path (v6e/v7x); f32 accumulation, bias, tanh
    # and carried hidden state.  Loose tolerance (bf16 re-quantizes h per step).
    out_bf16 = jax.block_until_ready(
        jax.jit(lambda xx, pp: rnn_forward(xx, pp, compute_dtype=jnp.bfloat16))(
            x, params))
    assert out_bf16.shape == (B, T, n_labels)
    assert float(jnp.max(jnp.abs(out_bf16 - ref))) < 0.25

    print("KERNEL_OK")
</pallas_src>

<mosaic_0001>
module attributes {stable_mosaic.version = 11 : i64} {
  func.func @matmul_bias_kernel(%arg0: i32, %arg1: i32, %arg2: memref<64x128xf32, #tpu.memory_space<vmem>>, %arg3: memref<128x128xf32, #tpu.memory_space<vmem>>, %arg4: memref<1x128xf32, #tpu.memory_space<vmem>>, %arg5: memref<64x128xf32, #tpu.memory_space<vmem>>) attributes {dimension_semantics = [#tpu.dimension_semantics<parallel>, #tpu.dimension_semantics<parallel>], iteration_bounds = array<i64: 1, 1>, scalar_prefetch = 0 : i64, scratch_operands = 0 : i64, tpu.core_type = #tpu.core_type<tc>, window_params = [{transform_indices = @transform_0, window_bounds = array<i64: 64, 128>}, {transform_indices = @transform_1, window_bounds = array<i64: 128, 128>}, {transform_indices = @transform_2, window_bounds = array<i64: 1, 128>}, {transform_indices = @transform_3, window_bounds = array<i64: 64, 128>}]} {
    %c0 = arith.constant 0 : index
    %c0_0 = arith.constant 0 : index
    %0 = vector.load %arg3[%c0, %c0_0] : memref<128x128xf32, #tpu.memory_space<vmem>>, vector<128x128xf32>
    %c0_1 = arith.constant 0 : index
    %c0_2 = arith.constant 0 : index
    %1 = vector.load %arg2[%c0_1, %c0_2] : memref<64x128xf32, #tpu.memory_space<vmem>>, vector<64x128xf32>
    %cst = arith.constant dense<0.000000e+00> : vector<64x128xf32>
    %2 = tpu.matmul %1, %0, %cst {dimension_numbers = #tpu.dot_dimension_numbers<[1], [0], [0], [1], [0, 0, 1, 1], [], []>} : vector<64x128xf32>, vector<128x128xf32>, vector<64x128xf32> -> vector<64x128xf32>
    %c0_3 = arith.constant 0 : index
    %c0_4 = arith.constant 0 : index
    %3 = vector.load %arg4[%c0_3, %c0_4] : memref<1x128xf32, #tpu.memory_space<vmem>>, vector<1x128xf32>
    %4 = vector.broadcast %3 : vector<1x128xf32> to vector<64x128xf32>
    %5 = arith.addf %2, %4 : vector<64x128xf32>
    %c0_5 = arith.constant 0 : index
    %c0_6 = arith.constant 0 : index
    %6 = vector.load %arg5[%c0_5, %c0_6] : memref<64x128xf32, #tpu.memory_space<vmem>>, vector<64x128xf32>
    tpu.vector_store %arg5[%c0_5, %c0_6], %5 {strides = array<i32>} : memref<64x128xf32, #tpu.memory_space<vmem>>, vector<64x128xf32>,
    return
  }
  func.func @transform_0(%arg0: i32, %arg1: i32) -> (i32, i32) {
    %c0_i32 = arith.constant 0 : i32
    %c0_i32_0 = arith.constant 0 : i32
    return %arg0, %c0_i32 : i32, i32
  }
  func.func @transform_1(%arg0: i32, %arg1: i32) -> (i32, i32) {
    %c0_i32 = arith.constant 0 : i32
    %c0_i32_0 = arith.constant 0 : i32
    return %c0_i32, %arg1 : i32, i32
  }
  func.func @transform_2(%arg0: i32, %arg1: i32) -> (i32, i32) {
    %c0_i32 = arith.constant 0 : i32
    %c0_i32_0 = arith.constant 0 : i32
    return %c0_i32, %arg1 : i32, i32
  }
  func.func @transform_3(%arg0: i32, %arg1: i32) -> (i32, i32) {
    %c0_i32 = arith.constant 0 : i32
    return %arg0, %arg1 : i32, i32
  }
}

module attributes {stable_mosaic.version = 11 : i64} {
  func.func @kernel(%arg0: i32, %arg1: i32, %arg2: memref<8x8x128xf32, #tpu.memory_space<vmem>>, %arg3: memref<128x128xf32, #tpu.memory_space<vmem>>, %arg4: memref<128x128xf32, #tpu.memory_space<vmem>>, %arg5: memref<1x128xf32, #tpu.memory_space<vmem>>, %arg6: memref<8x8x128xf32, #tpu.memory_space<vmem>>, %arg7: memref<8x128xf32, #tpu.memory_space<vmem>>, %arg8: memref<8x8x128xf32, #tpu.memory_space<vmem>>) attributes {dimension_semantics = [#tpu.dimension_semantics<parallel>, #tpu.dimension_semantics<arbitrary>], iteration_bounds = array<i64: 1, 1>, scalar_prefetch = 0 : i64, scratch_operands = 2 : i64, tpu.core_type = #tpu.core_type<tc>, window_params = [{transform_indices = @transform_0, window_bounds = array<i64: 8, 8, 128>}, {pipeline_mode = #tpu.pipeline_mode<synchronous>, transform_indices = @transform_1, window_bounds = array<i64: 128, 128>}, {pipeline_mode = #tpu.pipeline_mode<synchronous>, transform_indices = @transform_2, window_bounds = array<i64: 128, 128>}, {pipeline_mode = #tpu.pipeline_mode<synchronous>, transform_indices = @transform_3, window_bounds = array<i64: 1, 128>}, {transform_indices = @transform_4, window_bounds = array<i64: 8, 8, 128>}]} {
    %c0_i32 = arith.constant 0 : i32
    %0 = arith.cmpi eq, %arg1, %c0_i32 : i32
    %1 = arith.extui %0 : i1 to i32
    %c0_i32_0 = arith.constant 0 : i32
    %2 = arith.cmpi ne, %1, %c0_i32_0 : i32
    scf.if %2 {
      %cst_57 = arith.constant 0.000000e+00 : f32
      %95 = vector.broadcast %cst_57 : f32 to vector<8x128xf32>
      %c0_58 = arith.constant 0 : index
      %c0_59 = arith.constant 0 : index
      %96 = vector.load %arg7[%c0_58, %c0_59] : memref<8x128xf32, #tpu.memory_space<vmem>>, vector<8x128xf32>
      tpu.vector_store %arg7[%c0_58, %c0_59], %95 {strides = array<i32>} : memref<8x128xf32, #tpu.memory_space<vmem>>, vector<8x128xf32>,
    } else {
    }
    %c0 = arith.constant 0 : index
    %c0_1 = arith.constant 0 : index
    %3 = vector.load %arg3[%c0, %c0_1] : memref<128x128xf32, #tpu.memory_space<vmem>>, vector<128x128xf32>
    %c0_2 = arith.constant 0 : index
    %c0_3 = arith.constant 0 : index
    %4 = vector.load %arg7[%c0_2, %c0_3] : memref<8x128xf32, #tpu.memory_space<vmem>>, vector<8x128xf32>
    %c0_i32_4 = arith.constant 0 : i32
    %cst = arith.constant dense<0.000000e+00> : vector<8x128xf32>
    %5 = tpu.matmul %4, %3, %cst {dimension_numbers = #tpu.dot_dimension_numbers<[1], [0], [0], [1], [0, 0, 1, 1], [], []>} : vector<8x128xf32>, vector<128x128xf32>, vector<8x128xf32> -> vector<8x128xf32>
    %6 = arith.index_cast %c0_i32_4 : i32 to index
    %c0_5 = arith.constant 0 : index
    %c0_6 = arith.constant 0 : index
    %7 = vector.load %arg2[%6, %c0_5, %c0_6] : memref<8x8x128xf32, #tpu.memory_space<vmem>>, vector<1x8x128xf32>
    %8 = vector.shape_cast %7 : vector<1x8x128xf32> to vector<8x128xf32>
    %9 = arith.addf %5, %8 : vector<8x128xf32>
    %10 = math.tanh %9 : vector<8x128xf32>
    %11 = arith.index_cast %c0_i32_4 : i32 to index
    %c0_7 = arith.constant 0 : index
    %c0_8 = arith.constant 0 : index
    %12 = vector.load %arg8[%11, %c0_7, %c0_8] : memref<8x8x128xf32, #tpu.memory_space<vmem>>, vector<1x8x128xf32>
    %13 = vector.shape_cast %12 : vector<1x8x128xf32> to vector<8x128xf32>
    %14 = vector.shape_cast %10 : vector<8x128xf32> to vector<1x8x128xf32>
    tpu.vector_store %arg8[%11, %c0_7, %c0_8], %14 {strides = array<i32>} : memref<8x8x128xf32, #tpu.memory_space<vmem>>, vector<1x8x128xf32>,
    %c1_i32 = arith.constant 1 : i32
    %cst_9 = arith.constant dense<0.000000e+00> : vector<8x128xf32>
    %15 = tpu.matmul %10, %3, %cst_9 {dimension_numbers = #tpu.dot_dimension_numbers<[1], [0], [0], [1], [0, 0, 1, 1], [], []>} : vector<8x128xf32>, vector<128x128xf32>, vector<8x128xf32> -> vector<8x128xf32>
    %16 = arith.index_cast %c1_i32 : i32 to index
    %c0_10 = arith.constant 0 : index
    %c0_11 = arith.constant 0 : index
    %17 = vector.load %arg2[%16, %c0_10, %c0_11] : memref<8x8x128xf32, #tpu.memory_space<vmem>>, vector<1x8x128xf32>
    %18 = vector.shape_cast %17 : vector<1x8x128xf32> to vector<8x128xf32>
    %19 = arith.addf %15, %18 : vector<8x128xf32>
    %20 = math.tanh %19 : vector<8x128xf32>
    %21 = arith.index_cast %c1_i32 : i32 to index
    %c0_12 = arith.constant 0 : index
    %c0_13 = arith.constant 0 : index
    %22 = vector.load %arg8[%21, %c0_12, %c0_13] : memref<8x8x128xf32, #tpu.memory_space<vmem>>, vector<1x8x128xf32>
    %23 = vector.shape_cast %22 : vector<1x8x128xf32> to vector<8x128xf32>
    %24 = vector.shape_cast %20 : vector<8x128xf32> to vector<1x8x128xf32>
    tpu.vector_store %arg8[%21, %c0_12, %c0_13], %24 {strides = array<i32>} : memref<8x8x128xf32, #tpu.memory_space<vmem>>, vector<1x8x128xf32>,
    %c2_i32 = arith.constant 2 : i32
    %cst_14 = arith.constant dense<0.000000e+00> : vector<8x128xf32>
    %25 = tpu.matmul %20, %3, %cst_14 {dimension_numbers = #tpu.dot_dimension_numbers<[1], [0], [0], [1], [0, 0, 1, 1], [], []>} : vector<8x128xf32>, vector<128x128xf32>, vector<8x128xf32> -> vector<8x128xf32>
    %26 = arith.index_cast %c2_i32 : i32 to index
    %c0_15 = arith.constant 0 : index
    %c0_16 = arith.constant 0 : index
    %27 = vector.load %arg2[%26, %c0_15, %c0_16] : memref<8x8x128xf32, #tpu.memory_space<vmem>>, vector<1x8x128xf32>
    %28 = vector.shape_cast %27 : vector<1x8x128xf32> to vector<8x128xf32>
    %29 = arith.addf %25, %28 : vector<8x128xf32>
    %30 = math.tanh %29 : vector<8x128xf32>
    %31 = arith.index_cast %c2_i32 : i32 to index
    %c0_17 = arith.constant 0 : index
    %c0_18 = arith.constant 0 : index
    %32 = vector.load %arg8[%31, %c0_17, %c0_18] : memref<8x8x128xf32, #tpu.memory_space<vmem>>, vector<1x8x128xf32>
    %33 = vector.shape_cast %32 : vector<1x8x128xf32> to vector<8x128xf32>
    %34 = vector.shape_cast %30 : vector<8x128xf32> to vector<1x8x128xf32>
    tpu.vector_store %arg8[%31, %c0_17, %c0_18], %34 {strides = array<i32>} : memref<8x8x128xf32, #tpu.memory_space<vmem>>, vector<1x8x128xf32>,
    %c3_i32 = arith.constant 3 : i32
    %cst_19 = arith.constant dense<0.000000e+00> : vector<8x128xf32>
    %35 = tpu.matmul %30, %3, %cst_19 {dimension_numbers = #tpu.dot_dimension_numbers<[1], [0], [0], [1], [0, 0, 1, 1], [], []>} : vector<8x128xf32>, vector<128x128xf32>, vector<8x128xf32> -> vector<8x128xf32>
    %36 = arith.index_cast %c3_i32 : i32 to index
    %c0_20 = arith.constant 0 : index
    %c0_21 = arith.constant 0 : index
    %37 = vector.load %arg2[%36, %c0_20, %c0_21] : memref<8x8x128xf32, #tpu.memory_space<vmem>>, vector<1x8x128xf32>
    %38 = vector.shape_cast %37 : vector<1x8x128xf32> to vector<8x128xf32>
    %39 = arith.addf %35, %38 : vector<8x128xf32>
    %40 = math.tanh %39 : vector<8x128xf32>
    %41 = arith.index_cast %c3_i32 : i32 to index
    %c0_22 = arith.constant 0 : index
    %c0_23 = arith.constant 0 : index
    %42 = vector.load %arg8[%41, %c0_22, %c0_23] : memref<8x8x128xf32, #tpu.memory_space<vmem>>, vector<1x8x128xf32>
    %43 = vector.shape_cast %42 : vector<1x8x128xf32> to vector<8x128xf32>
    %44 = vector.shape_cast %40 : vector<8x128xf32> to vector<1x8x128xf32>
    tpu.vector_store %arg8[%41, %c0_22, %c0_23], %44 {strides = array<i32>} : memref<8x8x128xf32, #tpu.memory_space<vmem>>, vector<1x8x128xf32>,
    %c4_i32 = arith.constant 4 : i32
    %cst_24 = arith.constant dense<0.000000e+00> : vector<8x128xf32>
    %45 = tpu.matmul %40, %3, %cst_24 {dimension_numbers = #tpu.dot_dimension_numbers<[1], [0], [0], [1], [0, 0, 1, 1], [], []>} : vector<8x128xf32>, vector<128x128xf32>, vector<8x128xf32> -> vector<8x128xf32>
    %46 = arith.index_cast %c4_i32 : i32 to index
    %c0_25 = arith.constant 0 : index
    %c0_26 = arith.constant 0 : index
    %47 = vector.load %arg2[%46, %c0_25, %c0_26] : memref<8x8x128xf32, #tpu.memory_space<vmem>>, vector<1x8x128xf32>
    %48 = vector.shape_cast %47 : vector<1x8x128xf32> to vector<8x128xf32>
    %49 = arith.addf %45, %48 : vector<8x128xf32>
    %50 = math.tanh %49 : vector<8x128xf32>
    %51 = arith.index_cast %c4_i32 : i32 to index
    %c0_27 = arith.constant 0 : index
    %c0_28 = arith.constant 0 : index
    %52 = vector.load %arg8[%51, %c0_27, %c0_28] : memref<8x8x128xf32, #tpu.memory_space<vmem>>, vector<1x8x128xf32>
    %53 = vector.shape_cast %52 : vector<1x8x128xf32> to vector<8x128xf32>
    %54 = vector.shape_cast %50 : vector<8x128xf32> to vector<1x8x128xf32>
    tpu.vector_store %arg8[%51, %c0_27, %c0_28], %54 {strides = array<i32>} : memref<8x8x128xf32, #tpu.memory_space<vmem>>, vector<1x8x128xf32>,
    %c5_i32 = arith.constant 5 : i32
    %cst_29 = arith.constant dense<0.000000e+00> : vector<8x128xf32>
    %55 = tpu.matmul %50, %3, %cst_29 {dimension_numbers = #tpu.dot_dimension_numbers<[1], [0], [0], [1], [0, 0, 1, 1], [], []>} : vector<8x128xf32>, vector<128x128xf32>, vector<8x128xf32> -> vector<8x128xf32>
    %56 = arith.index_cast %c5_i32 : i32 to index
    %c0_30 = arith.constant 0 : index
    %c0_31 = arith.constant 0 : index
    %57 = vector.load %arg2[%56, %c0_30, %c0_31] : memref<8x8x128xf32, #tpu.memory_space<vmem>>, vector<1x8x128xf32>
    %58 = vector.shape_cast %57 : vector<1x8x128xf32> to vector<8x128xf32>
    %59 = arith.addf %55, %58 : vector<8x128xf32>
    %60 = math.tanh %59 : vector<8x128xf32>
    %61 = arith.index_cast %c5_i32 : i32 to index
    %c0_32 = arith.constant 0 : index
    %c0_33 = arith.constant 0 : index
    %62 = vector.load %arg8[%61, %c0_32, %c0_33] : memref<8x8x128xf32, #tpu.memory_space<vmem>>, vector<1x8x128xf32>
    %63 = vector.shape_cast %62 : vector<1x8x128xf32> to vector<8x128xf32>
    %64 = vector.shape_cast %60 : vector<8x128xf32> to vector<1x8x128xf32>
    tpu.vector_store %arg8[%61, %c0_32, %c0_33], %64 {strides = array<i32>} : memref<8x8x128xf32, #tpu.memory_space<vmem>>, vector<1x8x128xf32>,
    %c6_i32 = arith.constant 6 : i32
    %cst_34 = arith.constant dense<0.000000e+00> : vector<8x128xf32>
    %65 = tpu.matmul %60, %3, %cst_34 {dimension_numbers = #tpu.dot_dimension_numbers<[1], [0], [0], [1], [0, 0, 1, 1], [], []>} : vector<8x128xf32>, vector<128x128xf32>, vector<8x128xf32> -> vector<8x128xf32>
    %66 = arith.index_cast %c6_i32 : i32 to index
    %c0_35 = arith.constant 0 : index
    %c0_36 = arith.constant 0 : index
    %67 = vector.load %arg2[%66, %c0_35, %c0_36] : memref<8x8x128xf32, #tpu.memory_space<vmem>>, vector<1x8x128xf32>
    %68 = vector.shape_cast %67 : vector<1x8x128xf32> to vector<8x128xf32>
    %69 = arith.addf %65, %68 : vector<8x128xf32>
    %70 = math.tanh %69 : vector<8x128xf32>
    %71 = arith.index_cast %c6_i32 : i32 to index
    %c0_37 = arith.constant 0 : index
    %c0_38 = arith.constant 0 : index
    %72 = vector.load %arg8[%71, %c0_37, %c0_38] : memref<8x8x128xf32, #tpu.memory_space<vmem>>, vector<1x8x128xf32>
    %73 = vector.shape_cast %72 : vector<1x8x128xf32> to vector<8x128xf32>
    %74 = vector.shape_cast %70 : vector<8x128xf32> to vector<1x8x128xf32>
    tpu.vector_store %arg8[%71, %c0_37, %c0_38], %74 {strides = array<i32>} : memref<8x8x128xf32, #tpu.memory_space<vmem>>, vector<1x8x128xf32>,
    %c7_i32 = arith.constant 7 : i32
    %cst_39 = arith.constant dense<0.000000e+00> : vector<8x128xf32>
    %75 = tpu.matmul %70, %3, %cst_39 {dimension_numbers = #tpu.dot_dimension_numbers<[1], [0], [0], [1], [0, 0, 1, 1], [], []>} : vector<8x128xf32>, vector<128x128xf32>, vector<8x128xf32> -> vector<8x128xf32>
    %76 = arith.index_cast %c7_i32 : i32 to index
    %c0_40 = arith.constant 0 : index
    %c0_41 = arith.constant 0 : index
    %77 = vector.load %arg2[%76, %c0_40, %c0_41] : memref<8x8x128xf32, #tpu.memory_space<vmem>>, vector<1x8x128xf32>
    %78 = vector.shape_cast %77 : vector<1x8x128xf32> to vector<8x128xf32>
    %79 = arith.addf %75, %78 : vector<8x128xf32>
    %80 = math.tanh %79 : vector<8x128xf32>
    %81 = arith.index_cast %c7_i32 : i32 to index
    %c0_42 = arith.constant 0 : index
    %c0_43 = arith.constant 0 : index
    %82 = vector.load %arg8[%81, %c0_42, %c0_43] : memref<8x8x128xf32, #tpu.memory_space<vmem>>, vector<1x8x128xf32>
    %83 = vector.shape_cast %82 : vector<1x8x128xf32> to vector<8x128xf32>
    %84 = vector.shape_cast %80 : vector<8x128xf32> to vector<1x8x128xf32>
    tpu.vector_store %arg8[%81, %c0_42, %c0_43], %84 {strides = array<i32>} : memref<8x8x128xf32, #tpu.memory_space<vmem>>, vector<1x8x128xf32>,
    %c8_i32 = arith.constant 8 : i32
    %c0_44 = arith.constant 0 : index
    %c0_45 = arith.constant 0 : index
    %85 = vector.load %arg7[%c0_44, %c0_45] : memref<8x128xf32, #tpu.memory_space<vmem>>, vector<8x128xf32>
    tpu.vector_store %arg7[%c0_44, %c0_45], %80 {strides = array<i32>} : memref<8x128xf32, #tpu.memory_space<vmem>>, vector<8x128xf32>,
    %c0_46 = arith.constant 0 : index
    %c0_47 = arith.constant 0 : index
    %86 = vector.load %arg4[%c0_46, %c0_47] : memref<128x128xf32, #tpu.memory_space<vmem>>, vector<128x128xf32>
    %c0_48 = arith.constant 0 : index
    %c0_49 = arith.constant 0 : index
    %c0_50 = arith.constant 0 : index
    %87 = vector.load %arg8[%c0_48, %c0_49, %c0_50] : memref<8x8x128xf32, #tpu.memory_space<vmem>>, vector<8x8x128xf32>
    %88 = vector.shape_cast %87 : vector<8x8x128xf32> to vector<64x128xf32>
    %cst_51 = arith.constant dense<0.000000e+00> : vector<64x128xf32>
    %89 = tpu.matmul %88, %86, %cst_51 {dimension_numbers = #tpu.dot_dimension_numbers<[1], [0], [0], [1], [0, 0, 1, 1], [], []>} : vector<64x128xf32>, vector<128x128xf32>, vector<64x128xf32> -> vector<64x128xf32>
    %c0_52 = arith.constant 0 : index
    %c0_53 = arith.constant 0 : index
    %90 = vector.load %arg5[%c0_52, %c0_53] : memref<1x128xf32, #tpu.memory_space<vmem>>, vector<1x128xf32>
    %91 = vector.broadcast %90 : vector<1x128xf32> to vector<64x128xf32>
    %92 = arith.addf %89, %91 : vector<64x128xf32>
    %93 = vector.shape_cast %92 : vector<64x128xf32> to vector<8x8x128xf32>
    %c0_54 = arith.constant 0 : index
    %c0_55 = arith.constant 0 : index
    %c0_56 = arith.constant 0 : index
    %94 = vector.load %arg6[%c0_54, %c0_55, %c0_56] : memref<8x8x128xf32, #tpu.memory_space<vmem>>, vector<8x8x128xf32>
    tpu.vector_store %arg6[%c0_54, %c0_55, %c0_56], %93 {strides = array<i32>} : memref<8x8x128xf32, #tpu.memory_space<vmem>>, vector<8x8x128xf32>,
    return
  }
  func.func @transform_0(%arg0: i32, %arg1: i32) -> (i32, i32, i32) {
    %c0_i32 = arith.constant 0 : i32
    %c0_i32_0 = arith.constant 0 : i32
    return %arg1, %arg0, %c0_i32 : i32, i32, i32
  }
  func.func @transform_1(%arg0: i32, %arg1: i32) -> (i32, i32) {
    %c0_i32 = arith.constant 0 : i32
    %c0_i32_0 = arith.constant 0 : i32
    %c0_i32_1 = arith.constant 0 : i32
    return %c0_i32, %c0_i32_0 : i32, i32
  }
  func.func @transform_2(%arg0: i32, %arg1: i32) -> (i32, i32) {
    %c0_i32 = arith.constant 0 : i32
    %c0_i32_0 = arith.constant 0 : i32
    %c0_i32_1 = arith.constant 0 : i32
    return %c0_i32, %c0_i32_0 : i32, i32
  }
  func.func @transform_3(%arg0: i32, %arg1: i32) -> (i32, i32) {
    %c0_i32 = arith.constant 0 : i32
    %c0_i32_0 = arith.constant 0 : i32
    %c0_i32_1 = arith.constant 0 : i32
    return %c0_i32, %c0_i32_0 : i32, i32
  }
  func.func @transform_4(%arg0: i32, %arg1: i32) -> (i32, i32, i32) {
    %c0_i32 = arith.constant 0 : i32
    %c0_i32_0 = arith.constant 0 : i32
    return %arg1, %arg0, %c0_i32 : i32, i32, i32
  }
}

module attributes {stable_mosaic.version = 11 : i64} {
  func.func @kernel(%arg0: i32, %arg1: i32, %arg2: memref<8x8x128xf32, #tpu.memory_space<vmem>>, %arg3: memref<128x128xf32, #tpu.memory_space<vmem>>, %arg4: memref<128x128xf32, #tpu.memory_space<vmem>>, %arg5: memref<1x128xf32, #tpu.memory_space<vmem>>, %arg6: memref<8x8x128xf32, #tpu.memory_space<vmem>>, %arg7: memref<8x128xf32, #tpu.memory_space<vmem>>, %arg8: memref<8x8x128xf32, #tpu.memory_space<vmem>>) attributes {dimension_semantics = [#tpu.dimension_semantics<parallel>, #tpu.dimension_semantics<arbitrary>], iteration_bounds = array<i64: 1, 1>, scalar_prefetch = 0 : i64, scratch_operands = 2 : i64, tpu.core_type = #tpu.core_type<tc>, window_params = [{transform_indices = @transform_0, window_bounds = array<i64: 8, 8, 128>}, {pipeline_mode = #tpu.pipeline_mode<synchronous>, transform_indices = @transform_1, window_bounds = array<i64: 128, 128>}, {pipeline_mode = #tpu.pipeline_mode<synchronous>, transform_indices = @transform_2, window_bounds = array<i64: 128, 128>}, {pipeline_mode = #tpu.pipeline_mode<synchronous>, transform_indices = @transform_3, window_bounds = array<i64: 1, 128>}, {transform_indices = @transform_4, window_bounds = array<i64: 8, 8, 128>}]} {
    %c0_i32 = arith.constant 0 : i32
    %0 = arith.cmpi eq, %arg1, %c0_i32 : i32
    %1 = arith.extui %0 : i1 to i32
    %c0_i32_0 = arith.constant 0 : i32
    %2 = arith.cmpi ne, %1, %c0_i32_0 : i32
    scf.if %2 {
      %cst_71 = arith.constant 0.000000e+00 : f32
      %134 = vector.broadcast %cst_71 : f32 to vector<8x128xf32>
      %c0_72 = arith.constant 0 : index
      %c0_73 = arith.constant 0 : index
      %135 = vector.load %arg7[%c0_72, %c0_73] : memref<8x128xf32, #tpu.memory_space<vmem>>, vector<8x128xf32>
      tpu.vector_store %arg7[%c0_72, %c0_73], %134 {strides = array<i32>} : memref<8x128xf32, #tpu.memory_space<vmem>>, vector<8x128xf32>,
    } else {
    }
    %c0 = arith.constant 0 : index
    %c0_1 = arith.constant 0 : index
    %3 = vector.load %arg3[%c0, %c0_1] : memref<128x128xf32, #tpu.memory_space<vmem>>, vector<128x128xf32>
    %c0_2 = arith.constant 0 : index
    %c0_3 = arith.constant 0 : index
    %4 = vector.load %arg7[%c0_2, %c0_3] : memref<8x128xf32, #tpu.memory_space<vmem>>, vector<8x128xf32>
    %c0_i32_4 = arith.constant 0 : i32
    %cst = arith.constant dense<0.000000e+00> : vector<8x128xf32>
    %5 = tpu.matmul %4, %3, %cst {dimension_numbers = #tpu.dot_dimension_numbers<[1], [0], [0], [1], [0, 0, 1, 1], [], []>} : vector<8x128xf32>, vector<128x128xf32>, vector<8x128xf32> -> vector<8x128xf32>
    %6 = arith.index_cast %c0_i32_4 : i32 to index
    %c0_5 = arith.constant 0 : index
    %c0_6 = arith.constant 0 : index
    %7 = vector.load %arg2[%6, %c0_5, %c0_6] : memref<8x8x128xf32, #tpu.memory_space<vmem>>, vector<1x8x128xf32>
    %8 = vector.shape_cast %7 : vector<1x8x128xf32> to vector<8x128xf32>
    %9 = arith.addf %5, %8 : vector<8x128xf32>
    %10 = math.tanh %9 : vector<8x128xf32>
    %11 = arith.index_cast %c0_i32_4 : i32 to index
    %c0_7 = arith.constant 0 : index
    %c0_8 = arith.constant 0 : index
    %12 = vector.load %arg8[%11, %c0_7, %c0_8] : memref<8x8x128xf32, #tpu.memory_space<vmem>>, vector<1x8x128xf32>
    %13 = vector.shape_cast %12 : vector<1x8x128xf32> to vector<8x128xf32>
    %14 = vector.shape_cast %10 : vector<8x128xf32> to vector<1x8x128xf32>
    tpu.vector_store %arg8[%11, %c0_7, %c0_8], %14 {strides = array<i32>} : memref<8x8x128xf32, #tpu.memory_space<vmem>>, vector<1x8x128xf32>,
    %c1_i32 = arith.constant 1 : i32
    %cst_9 = arith.constant dense<0.000000e+00> : vector<8x128xf32>
    %15 = tpu.matmul %10, %3, %cst_9 {dimension_numbers = #tpu.dot_dimension_numbers<[1], [0], [0], [1], [0, 0, 1, 1], [], []>} : vector<8x128xf32>, vector<128x128xf32>, vector<8x128xf32> -> vector<8x128xf32>
    %16 = arith.index_cast %c1_i32 : i32 to index
    %c0_10 = arith.constant 0 : index
    %c0_11 = arith.constant 0 : index
    %17 = vector.load %arg2[%16, %c0_10, %c0_11] : memref<8x8x128xf32, #tpu.memory_space<vmem>>, vector<1x8x128xf32>
    %18 = vector.shape_cast %17 : vector<1x8x128xf32> to vector<8x128xf32>
    %19 = arith.addf %15, %18 : vector<8x128xf32>
    %20 = math.tanh %19 : vector<8x128xf32>
    %21 = arith.index_cast %c1_i32 : i32 to index
    %c0_12 = arith.constant 0 : index
    %c0_13 = arith.constant 0 : index
    %22 = vector.load %arg8[%21, %c0_12, %c0_13] : memref<8x8x128xf32, #tpu.memory_space<vmem>>, vector<1x8x128xf32>
    %23 = vector.shape_cast %22 : vector<1x8x128xf32> to vector<8x128xf32>
    %24 = vector.shape_cast %20 : vector<8x128xf32> to vector<1x8x128xf32>
    tpu.vector_store %arg8[%21, %c0_12, %c0_13], %24 {strides = array<i32>} : memref<8x8x128xf32, #tpu.memory_space<vmem>>, vector<1x8x128xf32>,
    %c2_i32 = arith.constant 2 : i32
    %cst_14 = arith.constant dense<0.000000e+00> : vector<8x128xf32>
    %25 = tpu.matmul %20, %3, %cst_14 {dimension_numbers = #tpu.dot_dimension_numbers<[1], [0], [0], [1], [0, 0, 1, 1], [], []>} : vector<8x128xf32>, vector<128x128xf32>, vector<8x128xf32> -> vector<8x128xf32>
    %26 = arith.index_cast %c2_i32 : i32 to index
    %c0_15 = arith.constant 0 : index
    %c0_16 = arith.constant 0 : index
    %27 = vector.load %arg2[%26, %c0_15, %c0_16] : memref<8x8x128xf32, #tpu.memory_space<vmem>>, vector<1x8x128xf32>
    %28 = vector.shape_cast %27 : vector<1x8x128xf32> to vector<8x128xf32>
    %29 = arith.addf %25, %28 : vector<8x128xf32>
    %30 = math.tanh %29 : vector<8x128xf32>
    %31 = arith.index_cast %c2_i32 : i32 to index
    %c0_17 = arith.constant 0 : index
    %c0_18 = arith.constant 0 : index
    %32 = vector.load %arg8[%31, %c0_17, %c0_18] : memref<8x8x128xf32, #tpu.memory_space<vmem>>, vector<1x8x128xf32>
    %33 = vector.shape_cast %32 : vector<1x8x128xf32> to vector<8x128xf32>
    %34 = vector.shape_cast %30 : vector<8x128xf32> to vector<1x8x128xf32>
    tpu.vector_store %arg8[%31, %c0_17, %c0_18], %34 {strides = array<i32>} : memref<8x8x128xf32, #tpu.memory_space<vmem>>, vector<1x8x128xf32>,
    %c3_i32 = arith.constant 3 : i32
    %cst_19 = arith.constant dense<0.000000e+00> : vector<8x128xf32>
    %35 = tpu.matmul %30, %3, %cst_19 {dimension_numbers = #tpu.dot_dimension_numbers<[1], [0], [0], [1], [0, 0, 1, 1], [], []>} : vector<8x128xf32>, vector<128x128xf32>, vector<8x128xf32> -> vector<8x128xf32>
    %36 = arith.index_cast %c3_i32 : i32 to index
    %c0_20 = arith.constant 0 : index
    %c0_21 = arith.constant 0 : index
    %37 = vector.load %arg2[%36, %c0_20, %c0_21] : memref<8x8x128xf32, #tpu.memory_space<vmem>>, vector<1x8x128xf32>
    %38 = vector.shape_cast %37 : vector<1x8x128xf32> to vector<8x128xf32>
    %39 = arith.addf %35, %38 : vector<8x128xf32>
    %40 = math.tanh %39 : vector<8x128xf32>
    %41 = arith.index_cast %c3_i32 : i32 to index
    %c0_22 = arith.constant 0 : index
    %c0_23 = arith.constant 0 : index
    %42 = vector.load %arg8[%41, %c0_22, %c0_23] : memref<8x8x128xf32, #tpu.memory_space<vmem>>, vector<1x8x128xf32>
    %43 = vector.shape_cast %42 : vector<1x8x128xf32> to vector<8x128xf32>
    %44 = vector.shape_cast %40 : vector<8x128xf32> to vector<1x8x128xf32>
    tpu.vector_store %arg8[%41, %c0_22, %c0_23], %44 {strides = array<i32>} : memref<8x8x128xf32, #tpu.memory_space<vmem>>, vector<1x8x128xf32>,
    %c4_i32 = arith.constant 4 : i32
    %cst_24 = arith.constant dense<0.000000e+00> : vector<8x128xf32>
    %45 = tpu.matmul %40, %3, %cst_24 {dimension_numbers = #tpu.dot_dimension_numbers<[1], [0], [0], [1], [0, 0, 1, 1], [], []>} : vector<8x128xf32>, vector<128x128xf32>, vector<8x128xf32> -> vector<8x128xf32>
    %46 = arith.index_cast %c4_i32 : i32 to index
    %c0_25 = arith.constant 0 : index
    %c0_26 = arith.constant 0 : index
    %47 = vector.load %arg2[%46, %c0_25, %c0_26] : memref<8x8x128xf32, #tpu.memory_space<vmem>>, vector<1x8x128xf32>
    %48 = vector.shape_cast %47 : vector<1x8x128xf32> to vector<8x128xf32>
    %49 = arith.addf %45, %48 : vector<8x128xf32>
    %50 = math.tanh %49 : vector<8x128xf32>
    %51 = arith.index_cast %c4_i32 : i32 to index
    %c0_27 = arith.constant 0 : index
    %c0_28 = arith.constant 0 : index
    %52 = vector.load %arg8[%51, %c0_27, %c0_28] : memref<8x8x128xf32, #tpu.memory_space<vmem>>, vector<1x8x128xf32>
    %53 = vector.shape_cast %52 : vector<1x8x128xf32> to vector<8x128xf32>
    %54 = vector.shape_cast %50 : vector<8x128xf32> to vector<1x8x128xf32>
    tpu.vector_store %arg8[%51, %c0_27, %c0_28], %54 {strides = array<i32>} : memref<8x8x128xf32, #tpu.memory_space<vmem>>, vector<1x8x128xf32>,
    %c5_i32 = arith.constant 5 : i32
    %cst_29 = arith.constant dense<0.000000e+00> : vector<8x128xf32>
    %55 = tpu.matmul %50, %3, %cst_29 {dimension_numbers = #tpu.dot_dimension_numbers<[1], [0], [0], [1], [0, 0, 1, 1], [], []>} : vector<8x128xf32>, vector<128x128xf32>, vector<8x128xf32> -> vector<8x128xf32>
    %56 = arith.index_cast %c5_i32 : i32 to index
    %c0_30 = arith.constant 0 : index
    %c0_31 = arith.constant 0 : index
    %57 = vector.load %arg2[%56, %c0_30, %c0_31] : memref<8x8x128xf32, #tpu.memory_space<vmem>>, vector<1x8x128xf32>
    %58 = vector.shape_cast %57 : vector<1x8x128xf32> to vector<8x128xf32>
    %59 = arith.addf %55, %58 : vector<8x128xf32>
    %60 = math.tanh %59 : vector<8x128xf32>
    %61 = arith.index_cast %c5_i32 : i32 to index
    %c0_32 = arith.constant 0 : index
    %c0_33 = arith.constant 0 : index
    %62 = vector.load %arg8[%61, %c0_32, %c0_33] : memref<8x8x128xf32, #tpu.memory_space<vmem>>, vector<1x8x128xf32>
    %63 = vector.shape_cast %62 : vector<1x8x128xf32> to vector<8x128xf32>
    %64 = vector.shape_cast %60 : vector<8x128xf32> to vector<1x8x128xf32>
    tpu.vector_store %arg8[%61, %c0_32, %c0_33], %64 {strides = array<i32>} : memref<8x8x128xf32, #tpu.memory_space<vmem>>, vector<1x8x128xf32>,
    %c6_i32 = arith.constant 6 : i32
    %cst_34 = arith.constant dense<0.000000e+00> : vector<8x128xf32>
    %65 = tpu.matmul %60, %3, %cst_34 {dimension_numbers = #tpu.dot_dimension_numbers<[1], [0], [0], [1], [0, 0, 1, 1], [], []>} : vector<8x128xf32>, vector<128x128xf32>, vector<8x128xf32> -> vector<8x128xf32>
    %66 = arith.index_cast %c6_i32 : i32 to index
    %c0_35 = arith.constant 0 : index
    %c0_36 = arith.constant 0 : index
    %67 = vector.load %arg2[%66, %c0_35, %c0_36] : memref<8x8x128xf32, #tpu.memory_space<vmem>>, vector<1x8x128xf32>
    %68 = vector.shape_cast %67 : vector<1x8x128xf32> to vector<8x128xf32>
    %69 = arith.addf %65, %68 : vector<8x128xf32>
    %70 = math.tanh %69 : vector<8x128xf32>
    %71 = arith.index_cast %c6_i32 : i32 to index
    %c0_37 = arith.constant 0 : index
    %c0_38 = arith.constant 0 : index
    %72 = vector.load %arg8[%71, %c0_37, %c0_38] : memref<8x8x128xf32, #tpu.memory_space<vmem>>, vector<1x8x128xf32>
    %73 = vector.shape_cast %72 : vector<1x8x128xf32> to vector<8x128xf32>
    %74 = vector.shape_cast %70 : vector<8x128xf32> to vector<1x8x128xf32>
    tpu.vector_store %arg8[%71, %c0_37, %c0_38], %74 {strides = array<i32>} : memref<8x8x128xf32, #tpu.memory_space<vmem>>, vector<1x8x128xf32>,
    %c7_i32 = arith.constant 7 : i32
    %cst_39 = arith.constant dense<0.000000e+00> : vector<8x128xf32>
    %75 = tpu.matmul %70, %3, %cst_39 {dimension_numbers = #tpu.dot_dimension_numbers<[1], [0], [0], [1], [0, 0, 1, 1], [], []>} : vector<8x128xf32>, vector<128x128xf32>, vector<8x128xf32> -> vector<8x128xf32>
    %76 = arith.index_cast %c7_i32 : i32 to index
    %c0_40 = arith.constant 0 : index
    %c0_41 = arith.constant 0 : index
    %77 = vector.load %arg2[%76, %c0_40, %c0_41] : memref<8x8x128xf32, #tpu.memory_space<vmem>>, vector<1x8x128xf32>
    %78 = vector.shape_cast %77 : vector<1x8x128xf32> to vector<8x128xf32>
    %79 = arith.addf %75, %78 : vector<8x128xf32>
    %80 = math.tanh %79 : vector<8x128xf32>
    %81 = arith.index_cast %c7_i32 : i32 to index
    %c0_42 = arith.constant 0 : index
    %c0_43 = arith.constant 0 : index
    %82 = vector.load %arg8[%81, %c0_42, %c0_43] : memref<8x8x128xf32, #tpu.memory_space<vmem>>, vector<1x8x128xf32>
    %83 = vector.shape_cast %82 : vector<1x8x128xf32> to vector<8x128xf32>
    %84 = vector.shape_cast %80 : vector<8x128xf32> to vector<1x8x128xf32>
    tpu.vector_store %arg8[%81, %c0_42, %c0_43], %84 {strides = array<i32>} : memref<8x8x128xf32, #tpu.memory_space<vmem>>, vector<1x8x128xf32>,
    %c8_i32 = arith.constant 8 : i32
    %c0_44 = arith.constant 0 : index
    %c0_45 = arith.constant 0 : index
    %85 = vector.load %arg7[%c0_44, %c0_45] : memref<8x128xf32, #tpu.memory_space<vmem>>, vector<8x128xf32>
    tpu.vector_store %arg7[%c0_44, %c0_45], %80 {strides = array<i32>} : memref<8x128xf32, #tpu.memory_space<vmem>>, vector<8x128xf32>,
    %c0_46 = arith.constant 0 : index
    %c0_47 = arith.constant 0 : index
    %86 = vector.load %arg4[%c0_46, %c0_47] : memref<128x128xf32, #tpu.memory_space<vmem>>, vector<128x128xf32>
    %c0_48 = arith.constant 0 : index
    %c0_49 = arith.constant 0 : index
    %c0_50 = arith.constant 0 : index
    %87 = vector.load %arg8[%c0_48, %c0_49, %c0_50] : memref<8x8x128xf32, #tpu.memory_space<vmem>>, vector<8x8x128xf32>
    %88 = vector.shape_cast %87 : vector<8x8x128xf32> to vector<64x128xf32>
    %cst_51 = arith.constant dense<0.000000e+00> : vector<64x128xf32>
    %89 = tpu.matmul %88, %86, %cst_51 {dimension_numbers = #tpu.dot_dimension_numbers<[1], [0], [0], [1], [0, 0, 1, 1], [], []>} : vector<64x128xf32>, vector<128x128xf32>, vector<64x128xf32> -> vector<64x128xf32>
    %c0_52 = arith.constant 0 : index
    %c0_53 = arith.constant 0 : index
    %90 = vector.load %arg5[%c0_52, %c0_53] : memref<1x128xf32, #tpu.memory_space<vmem>>, vector<1x128xf32>
    %91 = vector.broadcast %90 : vector<1x128xf32> to vector<64x128xf32>
    %92 = arith.addf %89, %91 : vector<64x128xf32>
    %93 = vector.shape_cast %92 : vector<64x128xf32> to vector<8x8x128xf32>
    %94 = vector.extract_strided_slice %93 {offsets = [0, 0, 0], sizes = [1, 8, 128], strides = [1, 1, 1]} : vector<8x8x128xf32> to vector<1x8x128xf32>
    %95 = vector.shape_cast %94 : vector<1x8x128xf32> to vector<8x128xf32>
    %c0_54 = arith.constant 0 : index
    %c0_55 = arith.constant 0 : index
    %c0_56 = arith.constant 0 : index
    %96 = vector.load %arg6[%c0_54, %c0_55, %c0_56] : memref<8x8x128xf32, #tpu.memory_space<vmem>>, vector<8x1x128xf32>
    %97 = vector.shape_cast %96 : vector<8x1x128xf32> to vector<8x128xf32>
    %98 = vector.shape_cast %95 : vector<8x128xf32> to vector<8x1x128xf32>
    tpu.vector_store %arg6[%c0_54, %c0_55, %c0_56], %98 {strides = array<i32>} : memref<8x8x128xf32, #tpu.memory_space<vmem>>, vector<8x1x128xf32>,
    %99 = vector.extract_strided_slice %93 {offsets = [1, 0, 0], sizes = [1, 8, 128], strides = [1, 1, 1]} : vector<8x8x128xf32> to vector<1x8x128xf32>
    %100 = vector.shape_cast %99 : vector<1x8x128xf32> to vector<8x128xf32>
    %c0_57 = arith.constant 0 : index
    %c1 = arith.constant 1 : index
    %c0_58 = arith.constant 0 : index
    %101 = vector.load %arg6[%c0_57, %c1, %c0_58] : memref<8x8x128xf32, #tpu.memory_space<vmem>>, vector<8x1x128xf32>
    %102 = vector.shape_cast %101 : vector<8x1x128xf32> to vector<8x128xf32>
    %103 = vector.shape_cast %100 : vector<8x128xf32> to vector<8x1x128xf32>
    tpu.vector_store %arg6[%c0_57, %c1, %c0_58], %103 {strides = array<i32>} : memref<8x8x128xf32, #tpu.memory_space<vmem>>, vector<8x1x128xf32>,
    %104 = vector.extract_strided_slice %93 {offsets = [2, 0, 0], sizes = [1, 8, 128], strides = [1, 1, 1]} : vector<8x8x128xf32> to vector<1x8x128xf32>
    %105 = vector.shape_cast %104 : vector<1x8x128xf32> to vector<8x128xf32>
    %c0_59 = arith.constant 0 : index
    %c2 = arith.constant 2 : index
    %c0_60 = arith.constant 0 : index
    %106 = vector.load %arg6[%c0_59, %c2, %c0_60] : memref<8x8x128xf32, #tpu.memory_space<vmem>>, vector<8x1x128xf32>
    %107 = vector.shape_cast %106 : vector<8x1x128xf32> to vector<8x128xf32>
    %108 = vector.shape_cast %105 : vector<8x128xf32> to vector<8x1x128xf32>
    tpu.vector_store %arg6[%c0_59, %c2, %c0_60], %108 {strides = array<i32>} : memref<8x8x128xf32, #tpu.memory_space<vmem>>, vector<8x1x128xf32>,
    %109 = vector.extract_strided_slice %93 {offsets = [3, 0, 0], sizes = [1, 8, 128], strides = [1, 1, 1]} : vector<8x8x128xf32> to vector<1x8x128xf32>
    %110 = vector.shape_cast %109 : vector<1x8x128xf32> to vector<8x128xf32>
    %c0_61 = arith.constant 0 : index
    %c3 = arith.constant 3 : index
    %c0_62 = arith.constant 0 : index
    %111 = vector.load %arg6[%c0_61, %c3, %c0_62] : memref<8x8x128xf32, #tpu.memory_space<vmem>>, vector<8x1x128xf32>
    %112 = vector.shape_cast %111 : vector<8x1x128xf32> to vector<8x128xf32>
    %113 = vector.shape_cast %110 : vector<8x128xf32> to vector<8x1x128xf32>
    tpu.vector_store %arg6[%c0_61, %c3, %c0_62], %113 {strides = array<i32>} : memref<8x8x128xf32, #tpu.memory_space<vmem>>, vector<8x1x128xf32>,
    %114 = vector.extract_strided_slice %93 {offsets = [4, 0, 0], sizes = [1, 8, 128], strides = [1, 1, 1]} : vector<8x8x128xf32> to vector<1x8x128xf32>
    %115 = vector.shape_cast %114 : vector<1x8x128xf32> to vector<8x128xf32>
    %c0_63 = arith.constant 0 : index
    %c4 = arith.constant 4 : index
    %c0_64 = arith.constant 0 : index
    %116 = vector.load %arg6[%c0_63, %c4, %c0_64] : memref<8x8x128xf32, #tpu.memory_space<vmem>>, vector<8x1x128xf32>
    %117 = vector.shape_cast %116 : vector<8x1x128xf32> to vector<8x128xf32>
    %118 = vector.shape_cast %115 : vector<8x128xf32> to vector<8x1x128xf32>
    tpu.vector_store %arg6[%c0_63, %c4, %c0_64], %118 {strides = array<i32>} : memref<8x8x128xf32, #tpu.memory_space<vmem>>, vector<8x1x128xf32>,
    %119 = vector.extract_strided_slice %93 {offsets = [5, 0, 0], sizes = [1, 8, 128], strides = [1, 1, 1]} : vector<8x8x128xf32> to vector<1x8x128xf32>
    %120 = vector.shape_cast %119 : vector<1x8x128xf32> to vector<8x128xf32>
    %c0_65 = arith.constant 0 : index
    %c5 = arith.constant 5 : index
    %c0_66 = arith.constant 0 : index
    %121 = vector.load %arg6[%c0_65, %c5, %c0_66] : memref<8x8x128xf32, #tpu.memory_space<vmem>>, vector<8x1x128xf32>
    %122 = vector.shape_cast %121 : vector<8x1x128xf32> to vector<8x128xf32>
    %123 = vector.shape_cast %120 : vector<8x128xf32> to vector<8x1x128xf32>
    tpu.vector_store %arg6[%c0_65, %c5, %c0_66], %123 {strides = array<i32>} : memref<8x8x128xf32, #tpu.memory_space<vmem>>, vector<8x1x128xf32>,
    %124 = vector.extract_strided_slice %93 {offsets = [6, 0, 0], sizes = [1, 8, 128], strides = [1, 1, 1]} : vector<8x8x128xf32> to vector<1x8x128xf32>
    %125 = vector.shape_cast %124 : vector<1x8x128xf32> to vector<8x128xf32>
    %c0_67 = arith.constant 0 : index
    %c6 = arith.constant 6 : index
    %c0_68 = arith.constant 0 : index
    %126 = vector.load %arg6[%c0_67, %c6, %c0_68] : memref<8x8x128xf32, #tpu.memory_space<vmem>>, vector<8x1x128xf32>
    %127 = vector.shape_cast %126 : vector<8x1x128xf32> to vector<8x128xf32>
    %128 = vector.shape_cast %125 : vector<8x128xf32> to vector<8x1x128xf32>
    tpu.vector_store %arg6[%c0_67, %c6, %c0_68], %128 {strides = array<i32>} : memref<8x8x128xf32, #tpu.memory_space<vmem>>, vector<8x1x128xf32>,
    %129 = vector.extract_strided_slice %93 {offsets = [7, 0, 0], sizes = [1, 8, 128], strides = [1, 1, 1]} : vector<8x8x128xf32> to vector<1x8x128xf32>
    %130 = vector.shape_cast %129 : vector<1x8x128xf32> to vector<8x128xf32>
    %c0_69 = arith.constant 0 : index
    %c7 = arith.constant 7 : index
    %c0_70 = arith.constant 0 : index
    %131 = vector.load %arg6[%c0_69, %c7, %c0_70] : memref<8x8x128xf32, #tpu.memory_space<vmem>>, vector<8x1x128xf32>
    %132 = vector.shape_cast %131 : vector<8x1x128xf32> to vector<8x128xf32>
    %133 = vector.shape_cast %130 : vector<8x128xf32> to vector<8x1x128xf32>
    tpu.vector_store %arg6[%c0_69, %c7, %c0_70], %133 {strides = array<i32>} : memref<8x8x128xf32, #tpu.memory_space<vmem>>, vector<8x1x128xf32>,
    return
  }
  func.func @transform_0(%arg0: i32, %arg1: i32) -> (i32, i32, i32) {
    %c0_i32 = arith.constant 0 : i32
    %c0_i32_0 = arith.constant 0 : i32
    return %arg1, %arg0, %c0_i32 : i32, i32, i32
  }
  func.func @transform_1(%arg0: i32, %arg1: i32) -> (i32, i32) {
    %c0_i32 = arith.constant 0 : i32
    %c0_i32_0 = arith.constant 0 : i32
    %c0_i32_1 = arith.constant 0 : i32
    return %c0_i32, %c0_i32_0 : i32, i32
  }
  func.func @transform_2(%arg0: i32, %arg1: i32) -> (i32, i32) {
    %c0_i32 = arith.constant 0 : i32
    %c0_i32_0 = arith.constant 0 : i32
    %c0_i32_1 = arith.constant 0 : i32
    return %c0_i32, %c0_i32_0 : i32, i32
  }
  func.func @transform_3(%arg0: i32, %arg1: i32) -> (i32, i32) {
    %c0_i32 = arith.constant 0 : i32
    %c0_i32_0 = arith.constant 0 : i32
    %c0_i32_1 = arith.constant 0 : i32
    return %c0_i32, %c0_i32_0 : i32, i32
  }
  func.func @transform_4(%arg0: i32, %arg1: i32) -> (i32, i32, i32) {
    %c0_i32 = arith.constant 0 : i32
    %c0_i32_0 = arith.constant 0 : i32
    return %arg0, %arg1, %c0_i32 : i32, i32, i32
  }
}

</mosaic_0001>

<bundles_post_ra>
// kernel: rnn_forward.3
= control target key start
LH: loop header
LB: loop body
LE: loop exit
PB: predicated region body
PF: predicated region fallthrough
CT: control target
= control target key end

     0   :  { %s398_s1 = inlined_call_operand.vmem [shape: f32[128,128], index: 1, kind: input, shape index: {}]   ;;  %s399_s0 = inlined_call_operand.vmem [shape: f32[64,128], index: 0, kind: input, shape index: {}]   ;;  %s400_s2 = inlined_call_operand.vmem [shape: f32[1,128], index: 2, kind: input, shape index: {}]   ;;  %s401_s3 = inlined_call_operand.vmem [shape: f32[64,128], index: 3, kind: output, shape index: {}]  }
   0x1   :  { %v14_v0 = vld [vmem:[%s398_s1] sm:$0xff]  ;;  %v15_v1 = vld [vmem:[%s398_s1 + $0x8] sm:$0xff]  ;;  %v16_v2 = vld [vmem:[%s398_s1 + $0x10] sm:$0xff] }
   0x2   :  { %v231_v3 = vpack.c.bf16 %v15_v1, %v14_v0  ;;  %v17_v4 = vld [vmem:[%s398_s1 + $0x18] sm:$0xff]  ;;  %v18_v6 = vld [vmem:[%s398_s1 + $0x20] sm:$0xff]  ;;  %v19_v7 = vld [vmem:[%s398_s1 + $0x28] sm:$0xff] }
   0x3   :  { %v235_v5 = vpack.c.bf16 %v17_v4, %v16_v2  ;;  %v239_v8 = vpack.c.bf16 %v19_v7, %v18_v6  ;;  %v30_v9 = vld [vmem:[%s399_s0] sm:$0xff]  ;;  %v20_v11 = vld [vmem:[%s398_s1 + $0x30] sm:$0xff]  ;;  %v21_v12 = vld [vmem:[%s398_s1 + $0x38] sm:$0xff] }
   0x4   :  { %232 = vmatprep.subr.bf16.mxu0 %v231_v3  ;;  %263 = vmatprep.subr.bf16.mxu1 %v231_v3  ;;  %v34_v10 = vld [vmem:[%s399_s0 + $0x20] sm:$0xff]  ;;  %v243_v13 = vpack.c.bf16 %v21_v12, %v20_v11  ;;  %v23_v15 = vld [vmem:[%s398_s1 + $0x48] sm:$0xff]  ;;  %v24_v17 = vld [vmem:[%s398_s1 + $0x50] sm:$0xff] }
   0x5   :  { %234 = vmatpush3.bf16.msra.mxu0 %v231_v3  ;;  %271 = vmatpush3.bf16.msra.mxu1 %v231_v3  ;;  %v22_v14 = vld [vmem:[%s398_s1 + $0x40] sm:$0xff]  ;;  %v25_v18 = vld [vmem:[%s398_s1 + $0x58] sm:$0xff]  ;;  %v27_v21 = vld [vmem:[%s398_s1 + $0x68] sm:$0xff] }
   0x6   :  { %236 = vmatprep.subr.bf16.mxu0 %v235_v5  ;;  %264 = vmatprep.subr.bf16.mxu1 %v235_v5  ;;  %v247_v16 = vpack.c.bf16 %v23_v15, %v22_v14  ;;  %v251_v19 = vpack.c.bf16 %v25_v18, %v24_v17  ;;  %v26_v20 = vld [vmem:[%s398_s1 + $0x60] sm:$0xff]  ;;  %v28_v23 = vld [vmem:[%s398_s1 + $0x70] sm:$0xff]  ;;  %v29_v24 = vld [vmem:[%s398_s1 + $0x78] sm:$0xff] }
   0x7   :  { %219 = vmatprep.mubr.f32.mxu0 %v30_v9  ;;  %225 = vmatprep.mubr.f32.mxu1 %v34_v10  ;;  %v255_v22 = vpack.c.bf16 %v27_v21, %v26_v20  ;;  %v259_v25 = vpack.c.bf16 %v29_v24, %v28_v23  ;;  %v31_v26 = vld [vmem:[%s399_s0 + $0x8] sm:$0xff]  ;;  %v32_v28 = vld [vmem:[%s399_s0 + $0x10] sm:$0xff]  ;;  %v33_v30 = vld [vmem:[%s399_s0 + $0x18] sm:$0xff] }
   0x8   :  { %v35_v27 = vld [vmem:[%s399_s0 + $0x28] sm:$0xff]  ;;  %v36_v29 = vld [vmem:[%s399_s0 + $0x30] sm:$0xff]  ;;  %v37_v31 = vld [vmem:[%s399_s0 + $0x38] sm:$0xff] }
   0x9   :  { %238 = vmatpush3.bf16.msra.mxu0 %v235_v5  ;;  %272 = vmatpush3.bf16.msra.mxu1 %v235_v5  ;;  %v162_v32 = vld [vmem:[%s400_s2] ss:$0 sm:$0xff] }
   0xa   :  { %240 = vmatprep.subr.bf16.mxu0 %v239_v8  ;;  %265 = vmatprep.subr.bf16.mxu1 %v239_v8 }
   0xd   :  { %242 = vmatpush3.bf16.msra.mxu0 %v239_v8  ;;  %273 = vmatpush3.bf16.msra.mxu1 %v239_v8 }
   0xe   :  { %244 = vmatprep.subr.bf16.mxu0 %v243_v13  ;;  %266 = vmatprep.subr.bf16.mxu1 %v243_v13 }
  0x11   :  { %246 = vmatpush3.bf16.msra.mxu0 %v243_v13  ;;  %274 = vmatpush3.bf16.msra.mxu1 %v243_v13 }
  0x12   :  { %248 = vmatprep.subr.bf16.mxu0 %v247_v16  ;;  %267 = vmatprep.subr.bf16.mxu1 %v247_v16 }
  0x15   :  { %250 = vmatpush3.bf16.msra.mxu0 %v247_v16  ;;  %275 = vmatpush3.bf16.msra.mxu1 %v247_v16 }
  0x16   :  { %252 = vmatprep.subr.bf16.mxu0 %v251_v19  ;;  %268 = vmatprep.subr.bf16.mxu1 %v251_v19 }
  0x19   :  { %254 = vmatpush3.bf16.msra.mxu0 %v251_v19  ;;  %276 = vmatpush3.bf16.msra.mxu1 %v251_v19 }
  0x1a   :  { %256 = vmatprep.subr.bf16.mxu0 %v255_v22  ;;  %269 = vmatprep.subr.bf16.mxu1 %v255_v22 }
  0x1d   :  { %258 = vmatpush3.bf16.msra.mxu0 %v255_v22  ;;  %277 = vmatpush3.bf16.msra.mxu1 %v255_v22 }
  0x1e   :  { %260 = vmatprep.subr.bf16.mxu0 %v259_v25  ;;  %270 = vmatprep.subr.bf16.mxu1 %v259_v25 }
  0x21   :  { %262 = vmatpush3.bf16.msra.mxu0 %v259_v25  ;;  %278 = vmatpush3.bf16.msra.mxu1 %v259_v25 }
  0x24   :  { %220 = vmatmul.mubr.f32.vlgmr.msra.gmra.mrb[0].mxu0 %v31_v26  ;;  %226 = vmatmul.mubr.f32.vlgmr.msra.gmra.mrb[0].mxu1 %v35_v27 }
  0x25   :  { %222 = vmatprep.mubr.f32.mxu0 %v32_v28  ;;  %228 = vmatprep.mubr.f32.mxu1 %v36_v29 }
  0x28   :  { %223 = vmatmul.mubr.f32.gmra.mrb[2].mxu0 %v33_v30  ;;  %229 = vmatmul.mubr.f32.gmra.mrb[2].mxu1 %v37_v31 }
  0xf7   :  { %v221_v33 = vpop.f32.mrb[0].mxu0  ;;  %v227_v34 = vpop.f32.mrb[0].mxu1 }
  0xf8   :  { %v117_v35 = vadd.f32 %v221_v33, %v162_v32  ;;  %v137_v36 = vadd.f32 %v227_v34, %v162_v32  ;;  %v111_v37 = vpop.f32.mrb[1].mxu0  ;;  %v131_v38 = vpop.f32.mrb[1].mxu1 }
  0xf9   :  { %v112_v39 = vadd.f32 %v162_v32, %v111_v37  ;;  %v132_v40 = vadd.f32 %v162_v32, %v131_v38 }
  0xfa   :  { %151 = vst [vmem:[%s401_s3 + $0x8] sm:$0xff] %v117_v35  ;;  %155 = vst [vmem:[%s401_s3 + $0x28] sm:$0xff] %v137_v36 }
  0xfb   :  { %150 = vst [vmem:[%s401_s3] sm:$0xff] %v112_v39  ;;  %154 = vst [vmem:[%s401_s3 + $0x20] sm:$0xff] %v132_v40  ;;  %v224_v41 = vpop.f32.mrb[2].mxu0  ;;  %v230_v42 = vpop.f32.mrb[2].mxu1 }
  0xfc   :  { %v127_v43 = vadd.f32 %v224_v41, %v162_v32  ;;  %v147_v44 = vadd.f32 %v230_v42, %v162_v32  ;;  %v121_v45 = vpop.f32.mrb[3].mxu0  ;;  %v141_v46 = vpop.f32.mrb[3].mxu1 }
  0xfd   :  { %v122_v47 = vadd.f32 %v162_v32, %v121_v45  ;;  %v142_v48 = vadd.f32 %v162_v32, %v141_v46 }
  0xfe   :  { %153 = vst [vmem:[%s401_s3 + $0x18] sm:$0xff] %v127_v43  ;;  %157 = vst [vmem:[%s401_s3 + $0x38] sm:$0xff] %v147_v44 }
  0xff   :  { %152 = vst [vmem:[%s401_s3 + $0x10] sm:$0xff] %v122_v47  ;;  %156 = vst [vmem:[%s401_s3 + $0x30] sm:$0xff] %v142_v48 }

// kernel: rnn_forward.4
= control target key start
LH: loop header
LB: loop body
LE: loop exit
PB: predicated region body
PF: predicated region fallthrough
CT: control target
= control target key end

     0   :  { %v1521_v0 = vmov 0.0|0.0   ;;  %vm1522_vm0 = vmmov 0   ;;  %v1523_v4 = vmov 0.0   ;;  %s1877_s1 = inlined_call_operand.vmem [shape: f32[128,128], index: 1, kind: input, shape index: {}]   ;;  %s1878_s0 = inlined_call_operand.vmem [shape: f32[8,8,128], index: 0, kind: input, shape index: {}]   ;;  %s1879_s2 = inlined_call_operand.vmem [shape: f32[128,128], index: 2, kind: input, shape index: {}]   ;;  %s1880_s3 = inlined_call_operand.vmem [shape: f32[1,128], index: 3, kind: input, shape index: {}]   ;;  %s1881_s4 = inlined_call_operand.vmem [shape: f32[8,8,128], index: 4, kind: output, shape index: {}]  }
   0x1   :  { %1278 = vmatprep.subr.bf16.mxu1 %v1521_v0  ;;  %v22_v1 = vld [vmem:[%s1877_s1] sm:$0xff]  ;;  %v23_v2 = vld [vmem:[%s1877_s1 + $0x8] sm:$0xff]  ;;  %v24_v3 = vld [vmem:[%s1877_s1 + $0x10] sm:$0xff]  ;;  %986 = vmatprep.mubr.msk.f32.mxu1 %vm1522_vm0, %v1523_v4 }
   0x2   :  { %v1561_v5 = vpack.c.bf16 %v23_v2, %v22_v1  ;;  %v25_v6 = vld [vmem:[%s1877_s1 + $0x18] sm:$0xff]  ;;  %1326 = vmatprep.subr.bf16.mxu0 %v1521_v0  ;;  %1056 = vmatprep.mubr.msk.f32.mxu0 %vm1522_vm0, %v1523_v4  ;;  %v26_v8 = vld [vmem:[%s1877_s1 + $0x20] sm:$0xff]  ;;  %v27_v9 = vld [vmem:[%s1877_s1 + $0x28] sm:$0xff] }
   0x3   :  { %v1570_v7 = vpack.c.bf16 %v25_v6, %v24_v3  ;;  %v1582_v10 = vpack.c.bf16 %v27_v9, %v26_v8  ;;  %v28_v11 = vld [vmem:[%s1877_s1 + $0x30] sm:$0xff]  ;;  %v29_v12 = vld [vmem:[%s1877_s1 + $0x38] sm:$0xff]  ;;  %v30_v14 = vld [vmem:[%s1877_s1 + $0x40] sm:$0xff] }
   0x4   :  { %1280 = vmatpush3.bf16.msra.mxu1 %v1561_v5  ;;  %1328 = vmatpush3.bf16.msra.mxu0 %v1561_v5  ;;  %v1594_v13 = vpack.c.bf16 %v29_v12, %v28_v11  ;;  %v31_v15 = vld [vmem:[%s1877_s1 + $0x48] sm:$0xff]  ;;  %v32_v17 = vld [vmem:[%s1877_s1 + $0x50] sm:$0xff]  ;;  %v33_v18 = vld [vmem:[%s1877_s1 + $0x58] sm:$0xff] }
   0x5   :  { %1281 = vmatprep.subr.bf16.mxu1 %v1521_v0  ;;  %1329 = vmatprep.subr.bf16.mxu0 %v1521_v0  ;;  %v1606_v16 = vpack.c.bf16 %v31_v15, %v30_v14  ;;  %v1618_v19 = vpack.c.bf16 %v33_v18, %v32_v17  ;;  %v34_v20 = vld [vmem:[%s1877_s1 + $0x60] sm:$0xff]  ;;  %v35_v21 = vld [vmem:[%s1877_s1 + $0x68] sm:$0xff]  ;;  %v36_v23 = vld [vmem:[%s1877_s1 + $0x70] sm:$0xff] }
   0x6   :  { %v1630_v22 = vpack.c.bf16 %v35_v21, %v34_v20  ;;  %v37_v24 = vld [vmem:[%s1877_s1 + $0x78] sm:$0xff]  ;;  %v39_v26 = vld [vmem:[%s1878_s0] sm:$0xff]  ;;  %v786_v31 = vld [vmem:[%s1878_s0 + $0x8] sm:$0xff] }
   0x7   :  { %v1642_v25 = vpack.c.bf16 %v37_v24, %v36_v23  ;;  %v787_v36 = vld [vmem:[%s1878_s0 + $0x10] sm:$0xff]  ;;  %v788_v41 = vld [vmem:[%s1878_s0 + $0x18] sm:$0xff]  ;;  %v789_v46 = vld [vmem:[%s1878_s0 + $0x20] sm:$0xff] }
   0x8   :  { %1283 = vmatpush3.bf16.msra.mxu1 %v1570_v7  ;;  %1331 = vmatpush3.bf16.msra.mxu0 %v1570_v7  ;;  %v638_v51 = vld [vmem:[%s1879_s2] sm:$0xff]  ;;  %v639_v52 = vld [vmem:[%s1879_s2 + $0x8] sm:$0xff]  ;;  %v640_v58 = vld [vmem:[%s1879_s2 + $0x10] sm:$0xff] }
   0x9   :  { %1284 = vmatprep.subr.bf16.mxu1 %v1521_v0  ;;  %1332 = vmatprep.subr.bf16.mxu0 %v1521_v0  ;;  %v1470_v53 = vpack.c.bf16 %v639_v52, %v638_v51  ;;  %v790_v54 = vld [vmem:[%s1878_s0 + $0x28] sm:$0xff]  ;;  %v641_v59 = vld [vmem:[%s1879_s2 + $0x18] sm:$0xff]  ;;  %v642_v62 = vld [vmem:[%s1879_s2 + $0x20] sm:$0xff] }
   0xa   :  { %v1474_v60 = vpack.c.bf16 %v641_v59, %v640_v58  ;;  %v643_v63 = vld [vmem:[%s1879_s2 + $0x28] sm:$0xff]  ;;  %v644_v1 = vld [vmem:[%s1879_s2 + $0x30] sm:$0xff]  ;;  %v645_v2 = vld [vmem:[%s1879_s2 + $0x38] sm:$0xff] }
   0xb   :  { %v1482_v3 = vpack.c.bf16 %v645_v2, %v644_v1  ;;  %v649_v8 = vld [vmem:[%s1879_s2 + $0x58] sm:$0xff]  ;;  %v651_v11 = vld [vmem:[%s1879_s2 + $0x68] sm:$0xff]  ;;  %v793_v21 = vld [vmem:[%s1880_s3] ss:$0 sm:$0xff] }
   0xc   :  { %1286 = vmatpush3.bf16.msra.mxu1 %v1582_v10  ;;  %1334 = vmatpush3.bf16.msra.mxu0 %v1582_v10  ;;  %v653_v14 = vld [vmem:[%s1879_s2 + $0x78] sm:$0xff] }
   0xd   :  { %1287 = vmatprep.subr.bf16.mxu1 %v1521_v0  ;;  %1335 = vmatprep.subr.bf16.mxu0 %v1521_v0 }
  0x10   :  { %1289 = vmatpush3.bf16.msra.mxu1 %v1594_v13  ;;  %1337 = vmatpush3.bf16.msra.mxu0 %v1594_v13 }
  0x11   :  { %1290 = vmatprep.subr.bf16.mxu1 %v1521_v0  ;;  %1338 = vmatprep.subr.bf16.mxu0 %v1521_v0 }
  0x14   :  { %1292 = vmatpush3.bf16.msra.mxu1 %v1606_v16  ;;  %1340 = vmatpush3.bf16.msra.mxu0 %v1606_v16 }
  0x15   :  { %1293 = vmatprep.subr.bf16.mxu1 %v1521_v0  ;;  %1341 = vmatprep.subr.bf16.mxu0 %v1521_v0 }
  0x18   :  { %1295 = vmatpush3.bf16.msra.mxu1 %v1618_v19  ;;  %1343 = vmatpush3.bf16.msra.mxu0 %v1618_v19 }
  0x19   :  { %1296 = vmatprep.subr.bf16.mxu1 %v1521_v0  ;;  %1344 = vmatprep.subr.bf16.mxu0 %v1521_v0 }
  0x1c   :  { %1298 = vmatpush3.bf16.msra.mxu1 %v1630_v22  ;;  %1346 = vmatpush3.bf16.msra.mxu0 %v1630_v22 }
  0x1d   :  { %1299 = vmatprep.subr.bf16.mxu1 %v1521_v0  ;;  %1347 = vmatprep.subr.bf16.mxu0 %v1521_v0 }
  0x20   :  { %1301 = vmatpush3.bf16.msra.mxu1 %v1642_v25  ;;  %1349 = vmatpush3.bf16.msra.mxu0 %v1642_v25 }
  0x21   :  { %1302 = vmatprep.subr.bf16.mxu1 %v1521_v0  ;;  %1374 = vmatprep.subr.bf16.mxu0 %v1521_v0 }
  0x23   :  { %987 = vmatmul.mubr.f32.vlgmr.msra.gmra.mrb[0].mxu1 %v1523_v4 }
  0x24   :  { %1304 = vmatpush3.bf16.msra.mxu1 %v1561_v5  ;;  %1021 = vmatprep.mubr.msk.f32.mxu1 %vm1522_vm0, %v1523_v4 }
  0x25   :  { %1305 = vmatprep.subr.bf16.mxu1 %v1521_v0 }
  0x28   :  { %1307 = vmatpush3.bf16.msra.mxu1 %v1570_v7 }
  0x29   :  { %1308 = vmatprep.subr.bf16.mxu1 %v1521_v0 }
  0x2c   :  { %1310 = vmatpush3.bf16.msra.mxu1 %v1582_v10 }
  0x2d   :  { %1311 = vmatprep.subr.bf16.mxu1 %v1521_v0 }
  0x30   :  { %1313 = vmatpush3.bf16.msra.mxu1 %v1594_v13 }
  0x31   :  { %1314 = vmatprep.subr.bf16.mxu1 %v1521_v0 }
  0x34   :  { %1316 = vmatpush3.bf16.msra.mxu1 %v1606_v16 }
  0x35   :  { %1317 = vmatprep.subr.bf16.mxu1 %v1521_v0 }
  0x38   :  { %1319 = vmatpush3.bf16.msra.mxu1 %v1618_v19 }
  0x39   :  { %1320 = vmatprep.subr.bf16.mxu1 %v1521_v0 }
  0x3c   :  { %1322 = vmatpush3.bf16.msra.mxu1 %v1630_v22 }
  0x3d   :  { %1323 = vmatprep.subr.bf16.mxu1 %v1521_v0 }
  0x40   :  { %1325 = vmatpush3.bf16.msra.mxu1 %v1642_v25 }
  0x41   :  { %1350 = vmatprep.subr.bf16.mxu1 %v1521_v0 }
  0xf6   :  { %v106_v27 = vpop.f32.mrb[0].mxu1 }
  0xf7   :  { %v107_v28 = vadd.f32 %v106_v27, %v39_v26  ;;  %v988_v29 = vpop.f32.mrb[1].mxu1 }
  0xf9   :  { %1505 = vtanh.f32 %v107_v28 }
 0x103   :  { %v1673_v30 = vpop.eup %1505 }
 0x104   :  { %1022 = vmatmul.mubr.f32.vlgmr.msra.gmra.mrb[2].mxu1 %v1673_v30 }
 0x105   :  { %1352 = vmatpush3.bf16.msra.mxu1 %v1561_v5  ;;  %1091 = vmatprep.mubr.msk.f32.mxu1 %vm1522_vm0, %v1523_v4 }
 0x106   :  { %1353 = vmatprep.subr.bf16.mxu1 %v1521_v0 }
 0x109   :  { %1355 = vmatpush3.bf16.msra.mxu1 %v1570_v7 }
 0x10a   :  { %1356 = vmatprep.subr.bf16.mxu1 %v1521_v0 }
 0x10d   :  { %1358 = vmatpush3.bf16.msra.mxu1 %v1582_v10 }
 0x10e   :  { %1359 = vmatprep.subr.bf16.mxu1 %v1521_v0 }
 0x111   :  { %1361 = vmatpush3.bf16.msra.mxu1 %v1594_v13 }
 0x112   :  { %1362 = vmatprep.subr.bf16.mxu1 %v1521_v0 }
 0x115   :  { %1364 = vmatpush3.bf16.msra.mxu1 %v1606_v16 }
 0x116   :  { %1365 = vmatprep.subr.bf16.mxu1 %v1521_v0 }
 0x119   :  { %1367 = vmatpush3.bf16.msra.mxu1 %v1618_v19 }
 0x11a   :  { %1368 = vmatprep.subr.bf16.mxu1 %v1521_v0 }
 0x11d   :  { %1370 = vmatpush3.bf16.msra.mxu1 %v1630_v22 }
 0x11e   :  { %1371 = vmatprep.subr.bf16.mxu1 %v1521_v0 }
 0x121   :  { %1373 = vmatpush3.bf16.msra.mxu1 %v1642_v25 }
 0x122   :  { %1398 = vmatprep.subr.bf16.mxu1 %v1521_v0 }
 0x1d7   :  { %v180_v32 = vpop.f32.mrb[2].mxu1 }
 0x1d8   :  { %v181_v33 = vadd.f32 %v786_v31, %v180_v32  ;;  %v1023_v34 = vpop.f32.mrb[3].mxu1 }
 0x1d9   :  { %v792_v34 = vld [vmem:[%s1878_s0 + $0x38] sm:$0xff] }
 0x1da   :  { %1507 = vtanh.f32 %v181_v33 }
 0x1e4   :  { %v1697_v35 = vpop.eup %1507 }
 0x1e5   :  { %1057 = vmatmul.mubr.f32.vlgmr.msra.gmra.mrb[0].mxu0 %v1697_v35 }
 0x1e6   :  { %1376 = vmatpush3.bf16.msra.mxu0 %v1561_v5  ;;  %1126 = vmatprep.mubr.msk.f32.mxu0 %vm1522_vm0, %v1523_v4 }
 0x1e7   :  { %1377 = vmatprep.subr.bf16.mxu0 %v1521_v0 }
 0x1ea   :  { %1379 = vmatpush3.bf16.msra.mxu0 %v1570_v7 }
 0x1eb   :  { %1380 = vmatprep.subr.bf16.mxu0 %v1521_v0 }
 0x1ee   :  { %1382 = vmatpush3.bf16.msra.mxu0 %v1582_v10 }
 0x1ef   :  { %1383 = vmatprep.subr.bf16.mxu0 %v1521_v0 }
 0x1f2   :  { %1385 = vmatpush3.bf16.msra.mxu0 %v1594_v13 }
 0x1f3   :  { %1386 = vmatprep.subr.bf16.mxu0 %v1521_v0 }
 0x1f6   :  { %1388 = vmatpush3.bf16.msra.mxu0 %v1606_v16 }
 0x1f7   :  { %1389 = vmatprep.subr.bf16.mxu0 %v1521_v0 }
 0x1fa   :  { %1391 = vmatpush3.bf16.msra.mxu0 %v1618_v19 }
 0x1fb   :  { %1392 = vmatprep.subr.bf16.mxu0 %v1521_v0 }
 0x1fe   :  { %1394 = vmatpush3.bf16.msra.mxu0 %v1630_v22 }
 0x1ff   :  { %1395 = vmatprep.subr.bf16.mxu0 %v1521_v0 }
 0x202   :  { %1397 = vmatpush3.bf16.msra.mxu0 %v1642_v25 }
 0x203   :  { %1422 = vmatprep.subr.bf16.mxu0 %v1521_v0 }
 0x2b8   :  { %v255_v37 = vpop.f32.mrb[0].mxu0 }
 0x2b9   :  { %v256_v38 = vadd.f32 %v787_v36, %v255_v37  ;;  %v1058_v39 = vpop.f32.mrb[1].mxu0 }
 0x2bb   :  { %1509 = vtanh.f32 %v256_v38 }
 0x2c5   :  { %v1721_v40 = vpop.eup %1509 }
 0x2c6   :  { %1092 = vmatmul.mubr.f32.vlgmr.msra.gmra.mrb[4].mxu1 %v1721_v40 }
 0x2c7   :  { %1400 = vmatpush3.bf16.msra.mxu1 %v1561_v5  ;;  %1161 = vmatprep.mubr.msk.f32.mxu1 %vm1522_vm0, %v1523_v4 }
 0x2c8   :  { %1401 = vmatprep.subr.bf16.mxu1 %v1521_v0 }
 0x2cb   :  { %1403 = vmatpush3.bf16.msra.mxu1 %v1570_v7 }
 0x2cc   :  { %1404 = vmatprep.subr.bf16.mxu1 %v1521_v0 }
 0x2cf   :  { %1406 = vmatpush3.bf16.msra.mxu1 %v1582_v10 }
 0x2d0   :  { %1407 = vmatprep.subr.bf16.mxu1 %v1521_v0 }
 0x2d3   :  { %1409 = vmatpush3.bf16.msra.mxu1 %v1594_v13 }
 0x2d4   :  { %1410 = vmatprep.subr.bf16.mxu1 %v1521_v0 }
 0x2d7   :  { %1412 = vmatpush3.bf16.msra.mxu1 %v1606_v16 }
 0x2d8   :  { %1413 = vmatprep.subr.bf16.mxu1 %v1521_v0 }
 0x2db   :  { %1415 = vmatpush3.bf16.msra.mxu1 %v1618_v19 }
 0x2dc   :  { %1416 = vmatprep.subr.bf16.mxu1 %v1521_v0 }
 0x2df   :  { %1418 = vmatpush3.bf16.msra.mxu1 %v1630_v22 }
 0x2e0   :  { %1419 = vmatprep.subr.bf16.mxu1 %v1521_v0 }
 0x2e3   :  { %1421 = vmatpush3.bf16.msra.mxu1 %v1642_v25 }
 0x2e4   :  { %1446 = vmatprep.subr.bf16.mxu1 %v1521_v0 }
 0x399   :  { %v330_v42 = vpop.f32.mrb[4].mxu1 }
 0x39a   :  { %v331_v43 = vadd.f32 %v788_v41, %v330_v42  ;;  %v1093_v44 = vpop.f32.mrb[5].mxu1 }
 0x39c   :  { %1511 = vtanh.f32 %v331_v43 }
 0x3a6   :  { %v1745_v45 = vpop.eup %1511 }
 0x3a7   :  { %1127 = vmatmul.mubr.f32.vlgmr.msra.gmra.mrb[2].mxu0 %v1745_v45 }
 0x3a8   :  { %1424 = vmatpush3.bf16.msra.mxu0 %v1561_v5  ;;  %1196 = vmatprep.mubr.msk.f32.mxu0 %vm1522_vm0, %v1523_v4 }
 0x3a9   :  { %1425 = vmatprep.subr.bf16.mxu0 %v1521_v0 }
 0x3ac   :  { %1427 = vmatpush3.bf16.msra.mxu0 %v1570_v7 }
 0x3ad   :  { %1428 = vmatprep.subr.bf16.mxu0 %v1521_v0 }
 0x3b0   :  { %1430 = vmatpush3.bf16.msra.mxu0 %v1582_v10 }
 0x3b1   :  { %1431 = vmatprep.subr.bf16.mxu0 %v1521_v0 }
 0x3b4   :  { %1433 = vmatpush3.bf16.msra.mxu0 %v1594_v13 }
 0x3b5   :  { %1434 = vmatprep.subr.bf16.mxu0 %v1521_v0 }
 0x3b8   :  { %1436 = vmatpush3.bf16.msra.mxu0 %v1606_v16 }
 0x3b9   :  { %1437 = vmatprep.subr.bf16.mxu0 %v1521_v0 }
 0x3bc   :  { %1439 = vmatpush3.bf16.msra.mxu0 %v1618_v19 }
 0x3bd   :  { %1440 = vmatprep.subr.bf16.mxu0 %v1521_v0 }
 0x3c0   :  { %1442 = vmatpush3.bf16.msra.mxu0 %v1630_v22 }
 0x3c1   :  { %1443 = vmatprep.subr.bf16.mxu0 %v1521_v0 }
 0x3c4   :  { %1445 = vmatpush3.bf16.msra.mxu0 %v1642_v25 }
 0x3c5   :  { %1471 = vmatprep.subr.bf16.mxu0 %v1470_v53 }
 0x47a   :  { %v405_v47 = vpop.f32.mrb[2].mxu0 }
 0x47b   :  { %v406_v48 = vadd.f32 %v789_v46, %v405_v47  ;;  %v1128_v49 = vpop.f32.mrb[3].mxu0 }
 0x47d   :  { %1513 = vtanh.f32 %v406_v48 }
 0x487   :  { %v1768_v50 = vpop.eup %1513 }
 0x488   :  { %1162 = vmatmul.mubr.f32.vlgmr.msra.gmra.mrb[6].mxu1 %v1768_v50 }
 0x489   :  { %1448 = vmatpush3.bf16.msra.mxu1 %v1561_v5  ;;  %1231 = vmatprep.mubr.msk.f32.mxu1 %vm1522_vm0, %v1523_v4  ;;  %v646_v4 = vld [vmem:[%s1879_s2 + $0x40] sm:$0xff]  ;;  %v647_v5 = vld [vmem:[%s1879_s2 + $0x48] sm:$0xff] }
 0x48a   :  { %1449 = vmatprep.subr.bf16.mxu1 %v1521_v0  ;;  %v1486_v6 = vpack.c.bf16 %v647_v5, %v646_v4 }
 0x48d   :  { %1451 = vmatpush3.bf16.msra.mxu1 %v1570_v7  ;;  %v648_v7 = vld [vmem:[%s1879_s2 + $0x50] sm:$0xff] }
 0x48e   :  { %1452 = vmatprep.subr.bf16.mxu1 %v1521_v0  ;;  %v1490_v9 = vpack.c.bf16 %v649_v8, %v648_v7 }
 0x491   :  { %1454 = vmatpush3.bf16.msra.mxu1 %v1582_v10  ;;  %v650_v10 = vld [vmem:[%s1879_s2 + $0x60] sm:$0xff] }
 0x492   :  { %1455 = vmatprep.subr.bf16.mxu1 %v1521_v0  ;;  %v1494_v12 = vpack.c.bf16 %v651_v11, %v650_v10 }
 0x495   :  { %1457 = vmatpush3.bf16.msra.mxu1 %v1594_v13  ;;  %v652_v13 = vld [vmem:[%s1879_s2 + $0x70] sm:$0xff] }
 0x496   :  { %1458 = vmatprep.subr.bf16.mxu1 %v1521_v0  ;;  %v1498_v15 = vpack.c.bf16 %v653_v14, %v652_v13 }
 0x499   :  { %1460 = vmatpush3.bf16.msra.mxu1 %v1606_v16  ;;  %v791_v16 = vld [vmem:[%s1878_s0 + $0x30] sm:$0xff] }
 0x49a   :  { %1461 = vmatprep.subr.bf16.mxu1 %v1521_v0 }
 0x49d   :  { %1463 = vmatpush3.bf16.msra.mxu1 %v1618_v19 }
 0x49e   :  { %1464 = vmatprep.subr.bf16.mxu1 %v1521_v0 }
 0x4a1   :  { %1466 = vmatpush3.bf16.msra.mxu1 %v1630_v22 }
 0x4a2   :  { %1467 = vmatprep.subr.bf16.mxu1 %v1521_v0  ;;  %v1478_v0 = vpack.c.bf16 %v643_v63, %v642_v62 }
 0x4a5   :  { %1469 = vmatpush3.bf16.msra.mxu1 %v1642_v25 }
 0x55b   :  { %v480_v55 = vpop.f32.mrb[6].mxu1 }
 0x55c   :  { %v481_v56 = vadd.f32 %v790_v54, %v480_v55  ;;  %v1163_v57 = vpop.f32.mrb[7].mxu1 }
 0x55e   :  { %1515 = vtanh.f32 %v481_v56 }
 0x568   :  { %v1516_v61 = vpop.eup %1515 }
 0x569   :  { %1197 = vmatmul.mubr.f32.vlgmr.msra.gmra.mrb[4].mxu0 %v1516_v61 }
 0x56a   :  { %1473 = vmatpush3.bf16.msra.mxu0 %v1470_v53  ;;  %1266 = vmatprep.mubr.f32.mxu0 %v1673_v30 }
 0x56b   :  { %1475 = vmatprep.subr.bf16.mxu0 %v1474_v60 }
 0x56e   :  { %1477 = vmatpush3.bf16.msra.mxu0 %v1474_v60 }
 0x56f   :  { %1479 = vmatprep.subr.bf16.mxu0 %v1478_v0 }
 0x572   :  { %1481 = vmatpush3.bf16.msra.mxu0 %v1478_v0 }
 0x573   :  { %1483 = vmatprep.subr.bf16.mxu0 %v1482_v3 }
 0x576   :  { %1485 = vmatpush3.bf16.msra.mxu0 %v1482_v3 }
 0x577   :  { %1487 = vmatprep.subr.bf16.mxu0 %v1486_v6 }
 0x57a   :  { %1489 = vmatpush3.bf16.msra.mxu0 %v1486_v6 }
 0x57b   :  { %1491 = vmatprep.subr.bf16.mxu0 %v1490_v9 }
 0x57e   :  { %1493 = vmatpush3.bf16.msra.mxu0 %v1490_v9 }
 0x57f   :  { %1495 = vmatprep.subr.bf16.mxu0 %v1494_v12 }
 0x582   :  { %1497 = vmatpush3.bf16.msra.mxu0 %v1494_v12 }
 0x583   :  { %1499 = vmatprep.subr.bf16.mxu0 %v1498_v15 }
 0x586   :  { %1501 = vmatpush3.bf16.msra.mxu0 %v1498_v15 }
 0x589   :  { %1267 = vmatmul.mubr.f32.vlgmr.msra.gmra.mrb[6].mxu0 %v1697_v35 }
 0x58a   :  { %1269 = vmatprep.mubr.f32.mxu0 %v1721_v40 }
 0x58d   :  { %1270 = vmatmul.mubr.f32.gmra.mrb[8].mxu0 %v1745_v45 }
 0x58e   :  { %1272 = vmatprep.mubr.f32.mxu0 %v1768_v50 }
 0x591   :  { %1273 = vmatmul.mubr.f32.gmra.mrb[10].mxu0 %v1516_v61 }
 0x63c   :  { %v555_v17 = vpop.f32.mrb[4].mxu0 }
 0x63d   :  { %v556_v18 = vadd.f32 %v791_v16, %v555_v17  ;;  %v1198_v19 = vpop.f32.mrb[5].mxu0 }
 0x63f   :  { %1517 = vtanh.f32 %v556_v18 }
 0x649   :  { %v1518_v20 = vpop.eup %1517 }
 0x64a   :  { %1232 = vmatmul.mubr.f32.vlgmr.msra.gmra.mrb[8].mxu1 %v1518_v20  ;;  %1275 = vmatprep.mubr.f32.mxu0 %v1518_v20 }
 0x65c   :  { %v1268_v22 = vpop.f32.mrb[6].mxu0 }
 0x65d   :  { %v741_v23 = vadd.f32 %v1268_v22, %v793_v21  ;;  %v735_v24 = vpop.f32.mrb[7].mxu0 }
 0x65e   :  { %v736_v25 = vadd.f32 %v793_v21, %v735_v24 }
 0x65f   :  { %775 = vst [vmem:[%s1881_s4 + $0x8] sm:$0xff] %v741_v23 }
 0x660   :  { %774 = vst [vmem:[%s1881_s4] sm:$0xff] %v736_v25  ;;  %v1271_v26 = vpop.f32.mrb[8].mxu0 }
 0x661   :  { %v751_v27 = vadd.f32 %v1271_v26, %v793_v21  ;;  %v745_v28 = vpop.f32.mrb[9].mxu0 }
 0x662   :  { %v746_v29 = vadd.f32 %v793_v21, %v745_v28 }
 0x663   :  { %777 = vst [vmem:[%s1881_s4 + $0x18] sm:$0xff] %v751_v27 }
 0x664   :  { %776 = vst [vmem:[%s1881_s4 + $0x10] sm:$0xff] %v746_v29  ;;  %v1274_v30 = vpop.f32.mrb[10].mxu0 }
 0x665   :  { %v761_v31 = vadd.f32 %v1274_v30, %v793_v21  ;;  %v755_v32 = vpop.f32.mrb[11].mxu0 }
 0x666   :  { %v756_v33 = vadd.f32 %v793_v21, %v755_v32 }
 0x667   :  { %779 = vst [vmem:[%s1881_s4 + $0x28] sm:$0xff] %v761_v31 }
 0x668   :  { %778 = vst [vmem:[%s1881_s4 + $0x20] sm:$0xff] %v756_v33 }
 0x71d   :  { %v630_v35 = vpop.f32.mrb[8].mxu1 }
 0x71e   :  { %v631_v36 = vadd.f32 %v792_v34, %v630_v35  ;;  %v1233_v37 = vpop.f32.mrb[9].mxu1 }
 0x720   :  { %1519 = vtanh.f32 %v631_v36 }
 0x72a   :  { %v1520_v38 = vpop.eup %1519 }
 0x72b   :  { %1276 = vmatmul.mubr.f32.gmra.mrb[12].mxu0 %v1520_v38 }
 0x7fe   :  { %v1277_v39 = vpop.f32.mrb[12].mxu0 }
 0x7ff   :  { %v771_v40 = vadd.f32 %v1277_v39, %v793_v21  ;;  %v765_v41 = vpop.f32.mrb[13].mxu0 }
 0x800   :  { %v766_v42 = vadd.f32 %v793_v21, %v765_v41 }
 0x801   :  { %781 = vst [vmem:[%s1881_s4 + $0x38] sm:$0xff] %v771_v40 }
 0x802   :  { %780 = vst [vmem:[%s1881_s4 + $0x30] sm:$0xff] %v766_v42 }

// kernel: rnn_forward.5
= control target key start
LH: loop header
LB: loop body
LE: loop exit
PB: predicated region body
PF: predicated region fallthrough
CT: control target
= control target key end

     0   :  { %v2074_v0 = vmov 0.0|0.0   ;;  %vm2075_vm0 = vmmov 0   ;;  %v2076_v4 = vmov 0.0   ;;  %s2659_s1 = inlined_call_operand.vmem [shape: f32[128,128], index: 1, kind: input, shape index: {}]   ;;  %s2660_s0 = inlined_call_operand.vmem [shape: f32[8,8,128], index: 0, kind: input, shape index: {}]   ;;  %s2661_s2 = inlined_call_operand.vmem [shape: f32[128,128], index: 2, kind: input, shape index: {}]   ;;  %s2662_s3 = inlined_call_operand.vmem [shape: f32[1,128], index: 3, kind: input, shape index: {}]   ;;  %s2663_s4 = inlined_call_operand.vmem [shape: f32[8,8,128], index: 4, kind: output, shape index: {}]  }
   0x1   :  { %1830 = vmatprep.subr.bf16.mxu1 %v2074_v0  ;;  %v22_v1 = vld [vmem:[%s2659_s1] sm:$0xff]  ;;  %v23_v2 = vld [vmem:[%s2659_s1 + $0x8] sm:$0xff]  ;;  %v24_v3 = vld [vmem:[%s2659_s1 + $0x10] sm:$0xff]  ;;  %1538 = vmatprep.mubr.msk.f32.mxu1 %vm2075_vm0, %v2076_v4 }
   0x2   :  { %v2115_v5 = vpack.c.bf16 %v23_v2, %v22_v1  ;;  %v25_v6 = vld [vmem:[%s2659_s1 + $0x18] sm:$0xff]  ;;  %1878 = vmatprep.subr.bf16.mxu0 %v2074_v0  ;;  %1608 = vmatprep.mubr.msk.f32.mxu0 %vm2075_vm0, %v2076_v4  ;;  %v26_v8 = vld [vmem:[%s2659_s1 + $0x20] sm:$0xff]  ;;  %v27_v9 = vld [vmem:[%s2659_s1 + $0x28] sm:$0xff] }
   0x3   :  { %v2124_v7 = vpack.c.bf16 %v25_v6, %v24_v3  ;;  %v2136_v10 = vpack.c.bf16 %v27_v9, %v26_v8  ;;  %v28_v11 = vld [vmem:[%s2659_s1 + $0x30] sm:$0xff]  ;;  %v29_v12 = vld [vmem:[%s2659_s1 + $0x38] sm:$0xff]  ;;  %v30_v14 = vld [vmem:[%s2659_s1 + $0x40] sm:$0xff] }
   0x4   :  { %1832 = vmatpush3.bf16.msra.mxu1 %v2115_v5  ;;  %1880 = vmatpush3.bf16.msra.mxu0 %v2115_v5  ;;  %v2148_v13 = vpack.c.bf16 %v29_v12, %v28_v11  ;;  %v31_v15 = vld [vmem:[%s2659_s1 + $0x48] sm:$0xff]  ;;  %v32_v17 = vld [vmem:[%s2659_s1 + $0x50] sm:$0xff]  ;;  %v33_v18 = vld [vmem:[%s2659_s1 + $0x58] sm:$0xff] }
   0x5   :  { %1833 = vmatprep.subr.bf16.mxu1 %v2074_v0  ;;  %1881 = vmatprep.subr.bf16.mxu0 %v2074_v0  ;;  %v2160_v16 = vpack.c.bf16 %v31_v15, %v30_v14  ;;  %v2172_v19 = vpack.c.bf16 %v33_v18, %v32_v17  ;;  %v34_v20 = vld [vmem:[%s2659_s1 + $0x60] sm:$0xff]  ;;  %v35_v21 = vld [vmem:[%s2659_s1 + $0x68] sm:$0xff]  ;;  %v36_v23 = vld [vmem:[%s2659_s1 + $0x70] sm:$0xff] }
   0x6   :  { %v2184_v22 = vpack.c.bf16 %v35_v21, %v34_v20  ;;  %v37_v24 = vld [vmem:[%s2659_s1 + $0x78] sm:$0xff]  ;;  %v39_v26 = vld [vmem:[%s2660_s0] sm:$0xff]  ;;  %v1306_v31 = vld [vmem:[%s2660_s0 + $0x8] sm:$0xff]  ;;  %v2077_v21 = vmov 1966171168  }
   0x7   :  { %v2196_v25 = vpack.c.bf16 %v37_v24, %v36_v23  ;;  %v1307_v36 = vld [vmem:[%s2660_s0 + $0x10] sm:$0xff]  ;;  %v1308_v41 = vld [vmem:[%s2660_s0 + $0x18] sm:$0xff]  ;;  %v1309_v46 = vld [vmem:[%s2660_s0 + $0x20] sm:$0xff]  ;;  %v779_v23 = vlaneseq }
   0x8   :  { %1835 = vmatpush3.bf16.msra.mxu1 %v2124_v7  ;;  %1883 = vmatpush3.bf16.msra.mxu0 %v2124_v7  ;;  %v638_v51 = vld [vmem:[%s2661_s2] sm:$0xff]  ;;  %v639_v52 = vld [vmem:[%s2661_s2 + $0x8] sm:$0xff]  ;;  %v640_v58 = vld [vmem:[%s2661_s2 + $0x10] sm:$0xff] }
   0x9   :  { %1836 = vmatprep.subr.bf16.mxu1 %v2074_v0  ;;  %1884 = vmatprep.subr.bf16.mxu0 %v2074_v0  ;;  %v2022_v53 = vpack.c.bf16 %v639_v52, %v638_v51  ;;  %v1310_v54 = vld [vmem:[%s2660_s0 + $0x28] sm:$0xff]  ;;  %v641_v59 = vld [vmem:[%s2661_s2 + $0x18] sm:$0xff]  ;;  %v642_v62 = vld [vmem:[%s2661_s2 + $0x20] sm:$0xff] }
   0xa   :  { %v2026_v60 = vpack.c.bf16 %v641_v59, %v640_v58  ;;  %v643_v63 = vld [vmem:[%s2661_s2 + $0x28] sm:$0xff]  ;;  %v644_v1 = vld [vmem:[%s2661_s2 + $0x30] sm:$0xff]  ;;  %v645_v2 = vld [vmem:[%s2661_s2 + $0x38] sm:$0xff] }
   0xb   :  { %v2034_v3 = vpack.c.bf16 %v645_v2, %v644_v1  ;;  %v649_v8 = vld [vmem:[%s2661_s2 + $0x58] sm:$0xff]  ;;  %v651_v11 = vld [vmem:[%s2661_s2 + $0x68] sm:$0xff] }
   0xc   :  { %1838 = vmatpush3.bf16.msra.mxu1 %v2136_v10  ;;  %1886 = vmatpush3.bf16.msra.mxu0 %v2136_v10  ;;  %v653_v14 = vld [vmem:[%s2661_s2 + $0x78] sm:$0xff] }
   0xd   :  { %1839 = vmatprep.subr.bf16.mxu1 %v2074_v0  ;;  %1887 = vmatprep.subr.bf16.mxu0 %v2074_v0 }
  0x10   :  { %1841 = vmatpush3.bf16.msra.mxu1 %v2148_v13  ;;  %1889 = vmatpush3.bf16.msra.mxu0 %v2148_v13 }
  0x11   :  { %1842 = vmatprep.subr.bf16.mxu1 %v2074_v0  ;;  %1890 = vmatprep.subr.bf16.mxu0 %v2074_v0 }
  0x14   :  { %1844 = vmatpush3.bf16.msra.mxu1 %v2160_v16  ;;  %1892 = vmatpush3.bf16.msra.mxu0 %v2160_v16 }
  0x15   :  { %1845 = vmatprep.subr.bf16.mxu1 %v2074_v0  ;;  %1893 = vmatprep.subr.bf16.mxu0 %v2074_v0 }
  0x18   :  { %1847 = vmatpush3.bf16.msra.mxu1 %v2172_v19  ;;  %1895 = vmatpush3.bf16.msra.mxu0 %v2172_v19 }
  0x19   :  { %1848 = vmatprep.subr.bf16.mxu1 %v2074_v0  ;;  %1896 = vmatprep.subr.bf16.mxu0 %v2074_v0 }
  0x1c   :  { %1850 = vmatpush3.bf16.msra.mxu1 %v2184_v22  ;;  %1898 = vmatpush3.bf16.msra.mxu0 %v2184_v22 }
  0x1d   :  { %1851 = vmatprep.subr.bf16.mxu1 %v2074_v0  ;;  %1899 = vmatprep.subr.bf16.mxu0 %v2074_v0 }
  0x20   :  { %1853 = vmatpush3.bf16.msra.mxu1 %v2196_v25  ;;  %1901 = vmatpush3.bf16.msra.mxu0 %v2196_v25 }
  0x21   :  { %1854 = vmatprep.subr.bf16.mxu1 %v2074_v0  ;;  %1926 = vmatprep.subr.bf16.mxu0 %v2074_v0 }
  0x23   :  { %1539 = vmatmul.mubr.f32.vlgmr.msra.gmra.mrb[0].mxu1 %v2076_v4 }
  0x24   :  { %1856 = vmatpush3.bf16.msra.mxu1 %v2115_v5  ;;  %1573 = vmatprep.mubr.msk.f32.mxu1 %vm2075_vm0, %v2076_v4 }
  0x25   :  { %1857 = vmatprep.subr.bf16.mxu1 %v2074_v0 }
  0x28   :  { %1859 = vmatpush3.bf16.msra.mxu1 %v2124_v7 }
  0x29   :  { %1860 = vmatprep.subr.bf16.mxu1 %v2074_v0 }
  0x2c   :  { %1862 = vmatpush3.bf16.msra.mxu1 %v2136_v10 }
  0x2d   :  { %1863 = vmatprep.subr.bf16.mxu1 %v2074_v0 }
  0x30   :  { %1865 = vmatpush3.bf16.msra.mxu1 %v2148_v13 }
  0x31   :  { %1866 = vmatprep.subr.bf16.mxu1 %v2074_v0 }
  0x34   :  { %1868 = vmatpush3.bf16.msra.mxu1 %v2160_v16 }
  0x35   :  { %1869 = vmatprep.subr.bf16.mxu1 %v2074_v0 }
  0x38   :  { %1871 = vmatpush3.bf16.msra.mxu1 %v2172_v19 }
  0x39   :  { %1872 = vmatprep.subr.bf16.mxu1 %v2074_v0 }
  0x3c   :  { %1874 = vmatpush3.bf16.msra.mxu1 %v2184_v22 }
  0x3d   :  { %1875 = vmatprep.subr.bf16.mxu1 %v2074_v0 }
  0x40   :  { %1877 = vmatpush3.bf16.msra.mxu1 %v2196_v25 }
  0x41   :  { %1902 = vmatprep.subr.bf16.mxu1 %v2074_v0 }
  0xf6   :  { %v106_v27 = vpop.f32.mrb[0].mxu1 }
  0xf7   :  { %v107_v28 = vadd.f32 %v106_v27, %v39_v26  ;;  %v1540_v29 = vpop.f32.mrb[1].mxu1  ;;  %v2404_v26 = vld [vmem:[%s2662_s3] ss:$0 sm:$0xff] }
  0xf9   :  { %2058 = vtanh.f32 %v107_v28 }
 0x103   :  { %v2227_v30 = vpop.eup %2058 }
 0x104   :  { %1574 = vmatmul.mubr.f32.vlgmr.msra.gmra.mrb[2].mxu1 %v2227_v30 }
 0x105   :  { %1904 = vmatpush3.bf16.msra.mxu1 %v2115_v5  ;;  %1643 = vmatprep.mubr.msk.f32.mxu1 %vm2075_vm0, %v2076_v4 }
 0x106   :  { %1905 = vmatprep.subr.bf16.mxu1 %v2074_v0 }
 0x109   :  { %1907 = vmatpush3.bf16.msra.mxu1 %v2124_v7 }
 0x10a   :  { %1908 = vmatprep.subr.bf16.mxu1 %v2074_v0 }
 0x10d   :  { %1910 = vmatpush3.bf16.msra.mxu1 %v2136_v10 }
 0x10e   :  { %1911 = vmatprep.subr.bf16.mxu1 %v2074_v0 }
 0x111   :  { %1913 = vmatpush3.bf16.msra.mxu1 %v2148_v13 }
 0x112   :  { %1914 = vmatprep.subr.bf16.mxu1 %v2074_v0 }
 0x115   :  { %1916 = vmatpush3.bf16.msra.mxu1 %v2160_v16 }
 0x116   :  { %1917 = vmatprep.subr.bf16.mxu1 %v2074_v0 }
 0x119   :  { %1919 = vmatpush3.bf16.msra.mxu1 %v2172_v19 }
 0x11a   :  { %1920 = vmatprep.subr.bf16.mxu1 %v2074_v0 }
 0x11d   :  { %1922 = vmatpush3.bf16.msra.mxu1 %v2184_v22 }
 0x11e   :  { %1923 = vmatprep.subr.bf16.mxu1 %v2074_v0 }
 0x121   :  { %1925 = vmatpush3.bf16.msra.mxu1 %v2196_v25 }
 0x122   :  { %1950 = vmatprep.subr.bf16.mxu1 %v2074_v0 }
 0x1d7   :  { %v180_v32 = vpop.f32.mrb[2].mxu1 }
 0x1d8   :  { %v181_v33 = vadd.f32 %v1306_v31, %v180_v32  ;;  %v1575_v34 = vpop.f32.mrb[3].mxu1 }
 0x1da   :  { %2060 = vtanh.f32 %v181_v33 }
 0x1e4   :  { %v2251_v35 = vpop.eup %2060 }
 0x1e5   :  { %1609 = vmatmul.mubr.f32.vlgmr.msra.gmra.mrb[0].mxu0 %v2251_v35 }
 0x1e6   :  { %1928 = vmatpush3.bf16.msra.mxu0 %v2115_v5  ;;  %1678 = vmatprep.mubr.msk.f32.mxu0 %vm2075_vm0, %v2076_v4 }
 0x1e7   :  { %1929 = vmatprep.subr.bf16.mxu0 %v2074_v0 }
 0x1ea   :  { %1931 = vmatpush3.bf16.msra.mxu0 %v2124_v7 }
 0x1eb   :  { %1932 = vmatprep.subr.bf16.mxu0 %v2074_v0 }
 0x1ee   :  { %1934 = vmatpush3.bf16.msra.mxu0 %v2136_v10 }
 0x1ef   :  { %1935 = vmatprep.subr.bf16.mxu0 %v2074_v0 }
 0x1f2   :  { %1937 = vmatpush3.bf16.msra.mxu0 %v2148_v13 }
 0x1f3   :  { %1938 = vmatprep.subr.bf16.mxu0 %v2074_v0 }
 0x1f6   :  { %1940 = vmatpush3.bf16.msra.mxu0 %v2160_v16 }
 0x1f7   :  { %1941 = vmatprep.subr.bf16.mxu0 %v2074_v0 }
 0x1fa   :  { %1943 = vmatpush3.bf16.msra.mxu0 %v2172_v19 }
 0x1fb   :  { %1944 = vmatprep.subr.bf16.mxu0 %v2074_v0 }
 0x1fe   :  { %1946 = vmatpush3.bf16.msra.mxu0 %v2184_v22 }
 0x1ff   :  { %1947 = vmatprep.subr.bf16.mxu0 %v2074_v0 }
 0x202   :  { %1949 = vmatpush3.bf16.msra.mxu0 %v2196_v25 }
 0x203   :  { %1974 = vmatprep.subr.bf16.mxu0 %v2074_v0 }
 0x2b8   :  { %v255_v37 = vpop.f32.mrb[0].mxu0 }
 0x2b9   :  { %v256_v38 = vadd.f32 %v1307_v36, %v255_v37  ;;  %v1610_v39 = vpop.f32.mrb[1].mxu0 }
 0x2bb   :  { %2062 = vtanh.f32 %v256_v38 }
 0x2c5   :  { %v2275_v40 = vpop.eup %2062 }
 0x2c6   :  { %1644 = vmatmul.mubr.f32.vlgmr.msra.gmra.mrb[4].mxu1 %v2275_v40 }
 0x2c7   :  { %1952 = vmatpush3.bf16.msra.mxu1 %v2115_v5  ;;  %1713 = vmatprep.mubr.msk.f32.mxu1 %vm2075_vm0, %v2076_v4 }
 0x2c8   :  { %1953 = vmatprep.subr.bf16.mxu1 %v2074_v0 }
 0x2cb   :  { %1955 = vmatpush3.bf16.msra.mxu1 %v2124_v7 }
 0x2cc   :  { %1956 = vmatprep.subr.bf16.mxu1 %v2074_v0 }
 0x2cf   :  { %1958 = vmatpush3.bf16.msra.mxu1 %v2136_v10 }
 0x2d0   :  { %1959 = vmatprep.subr.bf16.mxu1 %v2074_v0 }
 0x2d3   :  { %1961 = vmatpush3.bf16.msra.mxu1 %v2148_v13 }
 0x2d4   :  { %1962 = vmatprep.subr.bf16.mxu1 %v2074_v0 }
 0x2d7   :  { %1964 = vmatpush3.bf16.msra.mxu1 %v2160_v16 }
 0x2d8   :  { %1965 = vmatprep.subr.bf16.mxu1 %v2074_v0 }
 0x2db   :  { %1967 = vmatpush3.bf16.msra.mxu1 %v2172_v19 }
 0x2dc   :  { %1968 = vmatprep.subr.bf16.mxu1 %v2074_v0 }
 0x2df   :  { %1970 = vmatpush3.bf16.msra.mxu1 %v2184_v22 }
 0x2e0   :  { %1971 = vmatprep.subr.bf16.mxu1 %v2074_v0 }
 0x2e3   :  { %1973 = vmatpush3.bf16.msra.mxu1 %v2196_v25 }
 0x2e4   :  { %1998 = vmatprep.subr.bf16.mxu1 %v2074_v0 }
 0x399   :  { %v330_v42 = vpop.f32.mrb[4].mxu1 }
 0x39a   :  { %v331_v43 = vadd.f32 %v1308_v41, %v330_v42  ;;  %v1645_v44 = vpop.f32.mrb[5].mxu1 }
 0x39c   :  { %2064 = vtanh.f32 %v331_v43 }
 0x3a6   :  { %v2299_v45 = vpop.eup %2064 }
 0x3a7   :  { %1679 = vmatmul.mubr.f32.vlgmr.msra.gmra.mrb[2].mxu0 %v2299_v45 }
 0x3a8   :  { %1976 = vmatpush3.bf16.msra.mxu0 %v2115_v5  ;;  %1748 = vmatprep.mubr.msk.f32.mxu0 %vm2075_vm0, %v2076_v4 }
 0x3a9   :  { %1977 = vmatprep.subr.bf16.mxu0 %v2074_v0 }
 0x3ac   :  { %1979 = vmatpush3.bf16.msra.mxu0 %v2124_v7 }
 0x3ad   :  { %1980 = vmatprep.subr.bf16.mxu0 %v2074_v0 }
 0x3b0   :  { %1982 = vmatpush3.bf16.msra.mxu0 %v2136_v10 }
 0x3b1   :  { %1983 = vmatprep.subr.bf16.mxu0 %v2074_v0 }
 0x3b4   :  { %1985 = vmatpush3.bf16.msra.mxu0 %v2148_v13 }
 0x3b5   :  { %1986 = vmatprep.subr.bf16.mxu0 %v2074_v0 }
 0x3b8   :  { %1988 = vmatpush3.bf16.msra.mxu0 %v2160_v16 }
 0x3b9   :  { %1989 = vmatprep.subr.bf16.mxu0 %v2074_v0 }
 0x3bc   :  { %1991 = vmatpush3.bf16.msra.mxu0 %v2172_v19 }
 0x3bd   :  { %1992 = vmatprep.subr.bf16.mxu0 %v2074_v0 }
 0x3c0   :  { %1994 = vmatpush3.bf16.msra.mxu0 %v2184_v22 }
 0x3c1   :  { %1995 = vmatprep.subr.bf16.mxu0 %v2074_v0 }
 0x3c4   :  { %1997 = vmatpush3.bf16.msra.mxu0 %v2196_v25 }
 0x3c5   :  { %2023 = vmatprep.subr.bf16.mxu0 %v2022_v53 }
 0x47a   :  { %v405_v47 = vpop.f32.mrb[2].mxu0 }
 0x47b   :  { %v406_v48 = vadd.f32 %v1309_v46, %v405_v47  ;;  %v1680_v49 = vpop.f32.mrb[3].mxu0 }
 0x47d   :  { %2066 = vtanh.f32 %v406_v48 }
 0x487   :  { %v2322_v50 = vpop.eup %2066 }
 0x488   :  { %1714 = vmatmul.mubr.f32.vlgmr.msra.gmra.mrb[6].mxu1 %v2322_v50 }
 0x489   :  { %2000 = vmatpush3.bf16.msra.mxu1 %v2115_v5  ;;  %1783 = vmatprep.mubr.msk.f32.mxu1 %vm2075_vm0, %v2076_v4  ;;  %v646_v4 = vld [vmem:[%s2661_s2 + $0x40] sm:$0xff]  ;;  %v647_v5 = vld [vmem:[%s2661_s2 + $0x48] sm:$0xff] }
 0x48a   :  { %2001 = vmatprep.subr.bf16.mxu1 %v2074_v0  ;;  %v2038_v6 = vpack.c.bf16 %v647_v5, %v646_v4 }
 0x48d   :  { %2003 = vmatpush3.bf16.msra.mxu1 %v2124_v7  ;;  %v648_v7 = vld [vmem:[%s2661_s2 + $0x50] sm:$0xff] }
 0x48e   :  { %2004 = vmatprep.subr.bf16.mxu1 %v2074_v0  ;;  %v2042_v9 = vpack.c.bf16 %v649_v8, %v648_v7 }
 0x491   :  { %2006 = vmatpush3.bf16.msra.mxu1 %v2136_v10  ;;  %v650_v10 = vld [vmem:[%s2661_s2 + $0x60] sm:$0xff] }
 0x492   :  { %2007 = vmatprep.subr.bf16.mxu1 %v2074_v0  ;;  %v2046_v12 = vpack.c.bf16 %v651_v11, %v650_v10 }
 0x495   :  { %2009 = vmatpush3.bf16.msra.mxu1 %v2148_v13  ;;  %v652_v13 = vld [vmem:[%s2661_s2 + $0x70] sm:$0xff] }
 0x496   :  { %2010 = vmatprep.subr.bf16.mxu1 %v2074_v0  ;;  %v2050_v15 = vpack.c.bf16 %v653_v14, %v652_v13 }
 0x499   :  { %2012 = vmatpush3.bf16.msra.mxu1 %v2160_v16  ;;  %v1311_v16 = vld [vmem:[%s2660_s0 + $0x30] sm:$0xff] }
 0x49a   :  { %2013 = vmatprep.subr.bf16.mxu1 %v2074_v0 }
 0x49d   :  { %2015 = vmatpush3.bf16.msra.mxu1 %v2172_v19 }
 0x49e   :  { %2016 = vmatprep.subr.bf16.mxu1 %v2074_v0 }
 0x4a1   :  { %2018 = vmatpush3.bf16.msra.mxu1 %v2184_v22  ;;  %v777_v22 = vunpack.c.l.s4 %v2077_v21 }
 0x4a2   :  { %2019 = vmatprep.subr.bf16.mxu1 %v2074_v0  ;;  %v2030_v0 = vpack.c.bf16 %v643_v63, %v642_v62 }
 0x4a3   :  { %v778_v24 = vunpack.c.0.s8 %v777_v22 }
 0x4a5   :  { %2021 = vmatpush3.bf16.msra.mxu1 %v2196_v25  ;;  %v780_v25 = vshrl.u32 %v779_v23, 7 }
 0x4a7   :  { %v2406_v27 = vsub.s32 %v778_v24, %v780_v25 }
 0x55b   :  { %v480_v55 = vpop.f32.mrb[6].mxu1 }
 0x55c   :  { %v481_v56 = vadd.f32 %v1310_v54, %v480_v55  ;;  %v1715_v57 = vpop.f32.mrb[7].mxu1 }
 0x55e   :  { %2068 = vtanh.f32 %v481_v56 }
 0x568   :  { %v2069_v61 = vpop.eup %2068 }
 0x569   :  { %1749 = vmatmul.mubr.f32.vlgmr.msra.gmra.mrb[4].mxu0 %v2069_v61 }
 0x56a   :  { %2025 = vmatpush3.bf16.msra.mxu0 %v2022_v53  ;;  %1818 = vmatprep.mubr.f32.mxu0 %v2227_v30 }
 0x56b   :  { %2027 = vmatprep.subr.bf16.mxu0 %v2026_v60 }
 0x56e   :  { %2029 = vmatpush3.bf16.msra.mxu0 %v2026_v60 }
 0x56f   :  { %2031 = vmatprep.subr.bf16.mxu0 %v2030_v0 }
 0x572   :  { %2033 = vmatpush3.bf16.msra.mxu0 %v2030_v0 }
 0x573   :  { %2035 = vmatprep.subr.bf16.mxu0 %v2034_v3 }
 0x576   :  { %2037 = vmatpush3.bf16.msra.mxu0 %v2034_v3 }
 0x577   :  { %2039 = vmatprep.subr.bf16.mxu0 %v2038_v6 }
 0x57a   :  { %2041 = vmatpush3.bf16.msra.mxu0 %v2038_v6 }
 0x57b   :  { %2043 = vmatprep.subr.bf16.mxu0 %v2042_v9 }
 0x57e   :  { %2045 = vmatpush3.bf16.msra.mxu0 %v2042_v9 }
 0x57f   :  { %2047 = vmatprep.subr.bf16.mxu0 %v2046_v12 }
 0x582   :  { %2049 = vmatpush3.bf16.msra.mxu0 %v2046_v12 }
 0x583   :  { %2051 = vmatprep.subr.bf16.mxu0 %v2050_v15 }
 0x586   :  { %2053 = vmatpush3.bf16.msra.mxu0 %v2050_v15 }
 0x589   :  { %1819 = vmatmul.mubr.f32.vlgmr.msra.gmra.mrb[6].mxu0 %v2251_v35 }
 0x58a   :  { %1821 = vmatprep.mubr.f32.mxu0 %v2275_v40 }
 0x58d   :  { %1822 = vmatmul.mubr.f32.gmra.mrb[8].mxu0 %v2299_v45 }
 0x58e   :  { %1824 = vmatprep.mubr.f32.mxu0 %v2322_v50 }
 0x591   :  { %1825 = vmatmul.mubr.f32.gmra.mrb[10].mxu0 %v2069_v61 }
 0x63c   :  { %v555_v17 = vpop.f32.mrb[4].mxu0 }
 0x63d   :  { %v556_v18 = vadd.f32 %v1311_v16, %v555_v17  ;;  %v1750_v19 = vpop.f32.mrb[5].mxu0 }
 0x63f   :  { %2070 = vtanh.f32 %v556_v18 }
 0x649   :  { %v2071_v20 = vpop.eup %2070 }
 0x64a   :  { %1784 = vmatmul.mubr.f32.vlgmr.msra.gmra.mrb[8].mxu1 %v2071_v20  ;;  %1827 = vmatprep.mubr.f32.mxu0 %v2071_v20 }
 0x65c   :  { %v1820_v28 = vpop.f32.mrb[6].mxu0 }
 0x65d   :  { %v741_v29 = vadd.f32 %v1820_v28, %v2404_v26  ;;  %v735_v30 = vpop.f32.mrb[7].mxu0 }
 0x65e   :  { %v736_v31 = vadd.f32 %v2404_v26, %v735_v30 }
 0x65f   :  { %v841_v32 = vcombine.high %v741_v29, %v741_v29  ;;  %v848_v33 = vrot.slane %v741_v29, %v2406_v27 }
 0x660   :  { %v775_v34 = vcombine.high %v736_v31, %v736_v31  ;;  %v782_v35 = vrot.slane %v736_v31, %v2406_v27  ;;  %v1823_v36 = vpop.f32.mrb[8].mxu0 }
 0x661   :  { %v855_v37 = vrot.slane %v841_v32, %v2406_v27  ;;  %v856_v38 = vcombine.high %v848_v33, %v848_v33  ;;  %v864_v39 = vrot.slane %v848_v33, %v2406_v27  ;;  %1318 = vst.sshfl [vmem:[%s2663_s4 + $0x1] sm:$0x1 pattern:$0x73625140] %v848_v33  ;;  %v751_v40 = vadd.f32 %v1823_v36, %v2404_v26  ;;  %v745_v41 = vpop.f32.mrb[9].mxu0 }
 0x662   :  { %v789_v42 = vrot.slane %v775_v34, %v2406_v27  ;;  %v790_v43 = vcombine.high %v782_v35, %v782_v35  ;;  %v798_v44 = vrot.slane %v782_v35, %v2406_v27  ;;  %1314 = vst.sshfl [vmem:[%s2663_s4] sm:$0x1 pattern:$0x73625140] %v782_v35  ;;  %v746_v45 = vadd.f32 %v2404_v26, %v745_v41 }
 0x663   :  { %v857_v46 = vcombine.high %v855_v37, %v855_v37  ;;  %v871_v47 = vrot.slane %v855_v37, %v2406_v27  ;;  %v878_v48 = vrot.slane %v856_v38, %v2406_v27  ;;  %v886_v49 = vcombine.high %v864_v39, %v864_v39  ;;  %1319 = vst.sshfl [vmem:[%s2663_s4 + $0x9] sm:$0x1 pattern:$0x73625140] %v856_v38 }
 0x664   :  { %1320 = vst.sshfl [vmem:[%s2663_s4 + $0x21] sm:$0x1 pattern:$0x73625140] %v855_v37  ;;  %v791_v50 = vcombine.high %v789_v42, %v789_v42  ;;  %v805_v51 = vrot.slane %v789_v42, %v2406_v27  ;;  %v812_v52 = vrot.slane %v790_v43, %v2406_v27  ;;  %v820_v53 = vcombine.high %v798_v44, %v798_v44  ;;  %v1826_v54 = vpop.f32.mrb[10].mxu0 }
 0x665   :  { %1315 = vst.sshfl [vmem:[%s2663_s4 + $0x8] sm:$0x1 pattern:$0x73625140] %v790_v43  ;;  %v885_v55 = vrot.slane %v857_v46, %v2406_v27  ;;  %v887_v56 = vcombine.high %v871_v47, %v871_v47  ;;  %v888_v57 = vcombine.high %v878_v48, %v878_v48  ;;  %900 = vst [vmem:[%s2663_s4 + $0x11] sm:$0x1] %v886_v49 }
 0x666   :  { %1316 = vst.sshfl [vmem:[%s2663_s4 + $0x20] sm:$0x1 pattern:$0x73625140] %v789_v42  ;;  %v973_v58 = vcombine.high %v751_v40, %v751_v40  ;;  %v755_v59 = vpop.f32.mrb[11].mxu0  ;;  %v819_v60 = vrot.slane %v791_v50, %v2406_v27  ;;  %v821_v61 = vcombine.high %v805_v51, %v805_v51  ;;  %v822_v62 = vcombine.high %v812_v52, %v812_v52 }
 0x667   :  { %1321 = vst.sshfl [vmem:[%s2663_s4 + $0x29] sm:$0x1 pattern:$0x73625140] %v857_v46  ;;  %834 = vst [vmem:[%s2663_s4 + $0x10] sm:$0x1] %v820_v53  ;;  %v980_v63 = vrot.slane %v751_v40, %v2406_v27  ;;  %v889_v0 = vcombine.high %v885_v55, %v885_v55  ;;  %v907_v2 = vcombine.high %v746_v45, %v746_v45 }
 0x668   :  { %1317 = vst.sshfl [vmem:[%s2663_s4 + $0x28] sm:$0x1 pattern:$0x73625140] %v791_v50  ;;  %901 = vst [vmem:[%s2663_s4 + $0x19] sm:$0x1] %v888_v57  ;;  %v987_v1 = vrot.slane %v973_v58, %v2406_v27  ;;  %v914_v3 = vrot.slane %v746_v45, %v2406_v27  ;;  %v823_v4 = vcombine.high %v819_v60, %v819_v60 }
 0x669   :  { %904 = vst [vmem:[%s2663_s4 + $0x31] sm:$0x1] %v887_v56  ;;  %835 = vst [vmem:[%s2663_s4 + $0x18] sm:$0x1] %v822_v62  ;;  %v988_v5 = vcombine.high %v980_v63, %v980_v63  ;;  %v996_v6 = vrot.slane %v980_v63, %v2406_v27  ;;  %v761_v7 = vadd.f32 %v1826_v54, %v2404_v26  ;;  %v1312_v56 = vld [vmem:[%s2660_s0 + $0x38] sm:$0xff] }
 0x66a   :  { %838 = vst [vmem:[%s2663_s4 + $0x30] sm:$0x1] %v821_v61  ;;  %1326 = vst.sshfl [vmem:[%s2663_s4 + $0x3] sm:$0x1 pattern:$0x73625140] %v980_v63  ;;  %v989_v8 = vcombine.high %v987_v1, %v987_v1  ;;  %v1003_v9 = vrot.slane %v987_v1, %v2406_v27  ;;  %v921_v10 = vrot.slane %v907_v2, %v2406_v27 }
 0x66b   :  { %905 = vst [vmem:[%s2663_s4 + $0x39] sm:$0x1] %v889_v0  ;;  %1328 = vst.sshfl [vmem:[%s2663_s4 + $0x23] sm:$0x1 pattern:$0x73625140] %v987_v1  ;;  %v922_v11 = vcombine.high %v914_v3, %v914_v3  ;;  %v1010_v12 = vrot.slane %v988_v5, %v2406_v27  ;;  %v1018_v13 = vcombine.high %v996_v6, %v996_v6 }
 0x66c   :  { %1322 = vst.sshfl [vmem:[%s2663_s4 + $0x2] sm:$0x1 pattern:$0x73625140] %v914_v3  ;;  %839 = vst [vmem:[%s2663_s4 + $0x38] sm:$0x1] %v823_v4  ;;  %v930_v14 = vrot.slane %v914_v3, %v2406_v27  ;;  %v1105_v15 = vcombine.high %v761_v7, %v761_v7  ;;  %v1017_v16 = vrot.slane %v989_v8, %v2406_v27 }
 0x66d   :  { %1327 = vst.sshfl [vmem:[%s2663_s4 + $0xb] sm:$0x1 pattern:$0x73625140] %v988_v5  ;;  %v1019_v17 = vcombine.high %v1003_v9, %v1003_v9  ;;  %v923_v18 = vcombine.high %v921_v10, %v921_v10  ;;  %v937_v19 = vrot.slane %v921_v10, %v2406_v27  ;;  %v1020_v20 = vcombine.high %v1010_v12, %v1010_v12 }
 0x66e   :  { %1329 = vst.sshfl [vmem:[%s2663_s4 + $0x2b] sm:$0x1 pattern:$0x73625140] %v989_v8  ;;  %1032 = vst [vmem:[%s2663_s4 + $0x13] sm:$0x1] %v1018_v13  ;;  %v944_v21 = vrot.slane %v922_v11, %v2406_v27  ;;  %v952_v22 = vcombine.high %v930_v14, %v930_v14  ;;  %v1112_v23 = vrot.slane %v761_v7, %v2406_v27 }
 0x66f   :  { %1323 = vst.sshfl [vmem:[%s2663_s4 + $0xa] sm:$0x1 pattern:$0x73625140] %v922_v11  ;;  %v1021_v24 = vcombine.high %v1017_v16, %v1017_v16  ;;  %1036 = vst [vmem:[%s2663_s4 + $0x33] sm:$0x1] %v1019_v17  ;;  %v951_v25 = vrot.slane %v923_v18, %v2406_v27  ;;  %v953_v28 = vcombine.high %v937_v19, %v937_v19 }
 0x670   :  { %1324 = vst.sshfl [vmem:[%s2663_s4 + $0x22] sm:$0x1 pattern:$0x73625140] %v921_v10  ;;  %v1119_v29 = vrot.slane %v1105_v15, %v2406_v27  ;;  %1033 = vst [vmem:[%s2663_s4 + $0x1b] sm:$0x1] %v1020_v20  ;;  %v954_v30 = vcombine.high %v944_v21, %v944_v21  ;;  %v1120_v31 = vcombine.high %v1112_v23, %v1112_v23 }
 0x671   :  { %1325 = vst.sshfl [vmem:[%s2663_s4 + $0x2a] sm:$0x1 pattern:$0x73625140] %v923_v18  ;;  %966 = vst [vmem:[%s2663_s4 + $0x12] sm:$0x1] %v952_v22  ;;  %v1128_v32 = vrot.slane %v1112_v23, %v2406_v27  ;;  %v756_v33 = vadd.f32 %v2404_v26, %v755_v59  ;;  %v955_v34 = vcombine.high %v951_v25, %v951_v25 }
 0x672   :  { %1334 = vst.sshfl [vmem:[%s2663_s4 + $0x5] sm:$0x1 pattern:$0x73625140] %v1112_v23  ;;  %1037 = vst [vmem:[%s2663_s4 + $0x3b] sm:$0x1] %v1021_v24  ;;  %v1121_v35 = vcombine.high %v1119_v29, %v1119_v29  ;;  %v1135_v36 = vrot.slane %v1119_v29, %v2406_v27  ;;  %v1142_v37 = vrot.slane %v1120_v31, %v2406_v27 }
 0x673   :  { %970 = vst [vmem:[%s2663_s4 + $0x32] sm:$0x1] %v953_v28  ;;  %1336 = vst.sshfl [vmem:[%s2663_s4 + $0x25] sm:$0x1 pattern:$0x73625140] %v1119_v29  ;;  %v1150_v38 = vcombine.high %v1128_v32, %v1128_v32  ;;  %v1039_v39 = vcombine.high %v756_v33, %v756_v33  ;;  %v1046_v40 = vrot.slane %v756_v33, %v2406_v27 }
 0x674   :  { %967 = vst [vmem:[%s2663_s4 + $0x1a] sm:$0x1] %v954_v30  ;;  %1335 = vst.sshfl [vmem:[%s2663_s4 + $0xd] sm:$0x1 pattern:$0x73625140] %v1120_v31  ;;  %v1149_v41 = vrot.slane %v1121_v35, %v2406_v27  ;;  %v1151_v42 = vcombine.high %v1135_v36, %v1135_v36  ;;  %v1152_v43 = vcombine.high %v1142_v37, %v1142_v37 }
 0x675   :  { %971 = vst [vmem:[%s2663_s4 + $0x3a] sm:$0x1] %v955_v34  ;;  %1337 = vst.sshfl [vmem:[%s2663_s4 + $0x2d] sm:$0x1 pattern:$0x73625140] %v1121_v35  ;;  %v1053_v44 = vrot.slane %v1039_v39, %v2406_v27  ;;  %v1054_v45 = vcombine.high %v1046_v40, %v1046_v40  ;;  %v1062_v46 = vrot.slane %v1046_v40, %v2406_v27 }
 0x676   :  { %1164 = vst [vmem:[%s2663_s4 + $0x15] sm:$0x1] %v1150_v38  ;;  %1330 = vst.sshfl [vmem:[%s2663_s4 + $0x4] sm:$0x1 pattern:$0x73625140] %v1046_v40  ;;  %v1153_v47 = vcombine.high %v1149_v41, %v1149_v41 }
 0x677   :  { %1168 = vst [vmem:[%s2663_s4 + $0x35] sm:$0x1] %v1151_v42  ;;  %1165 = vst [vmem:[%s2663_s4 + $0x1d] sm:$0x1] %v1152_v43  ;;  %v1055_v48 = vcombine.high %v1053_v44, %v1053_v44  ;;  %v1069_v49 = vrot.slane %v1053_v44, %v2406_v27  ;;  %v1076_v50 = vrot.slane %v1054_v45, %v2406_v27 }
 0x678   :  { %v1084_v51 = vcombine.high %v1062_v46, %v1062_v46  ;;  %1331 = vst.sshfl [vmem:[%s2663_s4 + $0xc] sm:$0x1 pattern:$0x73625140] %v1054_v45  ;;  %1169 = vst [vmem:[%s2663_s4 + $0x3d] sm:$0x1] %v1153_v47 }
 0x679   :  { %1332 = vst.sshfl [vmem:[%s2663_s4 + $0x24] sm:$0x1 pattern:$0x73625140] %v1053_v44  ;;  %v1083_v52 = vrot.slane %v1055_v48, %v2406_v27  ;;  %v1085_v53 = vcombine.high %v1069_v49, %v1069_v49  ;;  %v1086_v54 = vcombine.high %v1076_v50, %v1076_v50 }
 0x67a   :  { %1098 = vst [vmem:[%s2663_s4 + $0x14] sm:$0x1] %v1084_v51  ;;  %1333 = vst.sshfl [vmem:[%s2663_s4 + $0x2c] sm:$0x1 pattern:$0x73625140] %v1055_v48 }
 0x67b   :  { %v1087_v55 = vcombine.high %v1083_v52, %v1083_v52  ;;  %1099 = vst [vmem:[%s2663_s4 + $0x1c] sm:$0x1] %v1086_v54  ;;  %1102 = vst [vmem:[%s2663_s4 + $0x34] sm:$0x1] %v1085_v53 }
 0x67d   :  { %1103 = vst [vmem:[%s2663_s4 + $0x3c] sm:$0x1] %v1087_v55 }
 0x71d   :  { %v630_v57 = vpop.f32.mrb[8].mxu1 }
 0x71e   :  { %v631_v58 = vadd.f32 %v1312_v56, %v630_v57  ;;  %v1785_v59 = vpop.f32.mrb[9].mxu1 }
 0x720   :  { %2072 = vtanh.f32 %v631_v58 }
 0x72a   :  { %v2073_v60 = vpop.eup %2072 }
 0x72b   :  { %1828 = vmatmul.mubr.f32.gmra.mrb[12].mxu0 %v2073_v60 }
 0x7fe   :  { %v1829_v61 = vpop.f32.mrb[12].mxu0 }
 0x7ff   :  { %v771_v62 = vadd.f32 %v1829_v61, %v2404_v26  ;;  %v765_v63 = vpop.f32.mrb[13].mxu0 }
 0x800   :  { %v766_v0 = vadd.f32 %v2404_v26, %v765_v63 }
 0x801   :  { %v1237_v1 = vcombine.high %v771_v62, %v771_v62  ;;  %v1244_v2 = vrot.slane %v771_v62, %v2406_v27 }
 0x802   :  { %v1171_v3 = vcombine.high %v766_v0, %v766_v0  ;;  %v1178_v4 = vrot.slane %v766_v0, %v2406_v27 }
 0x803   :  { %v1251_v5 = vrot.slane %v1237_v1, %v2406_v27  ;;  %v1252_v6 = vcombine.high %v1244_v2, %v1244_v2  ;;  %v1260_v7 = vrot.slane %v1244_v2, %v2406_v27  ;;  %1342 = vst.sshfl [vmem:[%s2663_s4 + $0x7] sm:$0x1 pattern:$0x73625140] %v1244_v2 }
 0x804   :  { %v1185_v8 = vrot.slane %v1171_v3, %v2406_v27  ;;  %v1186_v9 = vcombine.high %v1178_v4, %v1178_v4  ;;  %v1194_v26 = vrot.slane %v1178_v4, %v2406_v27  ;;  %1338 = vst.sshfl [vmem:[%s2663_s4 + $0x6] sm:$0x1 pattern:$0x73625140] %v1178_v4 }
 0x805   :  { %v1253_v10 = vcombine.high %v1251_v5, %v1251_v5  ;;  %v1267_v11 = vrot.slane %v1251_v5, %v2406_v27  ;;  %v1274_v12 = vrot.slane %v1252_v6, %v2406_v27  ;;  %v1282_v13 = vcombine.high %v1260_v7, %v1260_v7  ;;  %1343 = vst.sshfl [vmem:[%s2663_s4 + $0xf] sm:$0x1 pattern:$0x73625140] %v1252_v6 }
 0x806   :  { %1344 = vst.sshfl [vmem:[%s2663_s4 + $0x27] sm:$0x1 pattern:$0x73625140] %v1251_v5  ;;  %v1187_v14 = vcombine.high %v1185_v8, %v1185_v8  ;;  %v1201_v15 = vrot.slane %v1185_v8, %v2406_v27  ;;  %v1208_v16 = vrot.slane %v1186_v9, %v2406_v27  ;;  %v1216_v17 = vcombine.high %v1194_v26, %v1194_v26 }
 0x807   :  { %1339 = vst.sshfl [vmem:[%s2663_s4 + $0xe] sm:$0x1 pattern:$0x73625140] %v1186_v9  ;;  %v1281_v18 = vrot.slane %v1253_v10, %v2406_v27  ;;  %v1283_v19 = vcombine.high %v1267_v11, %v1267_v11  ;;  %v1284_v20 = vcombine.high %v1274_v12, %v1274_v12  ;;  %1296 = vst [vmem:[%s2663_s4 + $0x17] sm:$0x1] %v1282_v13 }
 0x808   :  { %1340 = vst.sshfl [vmem:[%s2663_s4 + $0x26] sm:$0x1 pattern:$0x73625140] %v1185_v8  ;;  %v1215_v21 = vrot.slane %v1187_v14, %v2406_v27  ;;  %v1217_v22 = vcombine.high %v1201_v15, %v1201_v15  ;;  %v1218_v23 = vcombine.high %v1208_v16, %v1208_v16  ;;  %1230 = vst [vmem:[%s2663_s4 + $0x16] sm:$0x1] %v1216_v17 }
 0x809   :  { %1345 = vst.sshfl [vmem:[%s2663_s4 + $0x2f] sm:$0x1 pattern:$0x73625140] %v1253_v10  ;;  %v1285_v24 = vcombine.high %v1281_v18, %v1281_v18  ;;  %1297 = vst [vmem:[%s2663_s4 + $0x1f] sm:$0x1] %v1284_v20 }
 0x80a   :  { %1341 = vst.sshfl [vmem:[%s2663_s4 + $0x2e] sm:$0x1 pattern:$0x73625140] %v1187_v14  ;;  %1300 = vst [vmem:[%s2663_s4 + $0x37] sm:$0x1] %v1283_v19  ;;  %v1219_v27 = vcombine.high %v1215_v21, %v1215_v21 }
 0x80b   :  { %1231 = vst [vmem:[%s2663_s4 + $0x1e] sm:$0x1] %v1218_v23  ;;  %1234 = vst [vmem:[%s2663_s4 + $0x36] sm:$0x1] %v1217_v22 }
 0x80c   :  { %1301 = vst [vmem:[%s2663_s4 + $0x3f] sm:$0x1] %v1285_v24  ;;  %1235 = vst [vmem:[%s2663_s4 + $0x3e] sm:$0x1] %v1219_v27 }

</bundles_post_ra>
